<compile_context>
chip_gen: v6e
topology: v6e:2x2x1
jax: 0.10.0
libtpu: 0.0.40
codegen_flags: <defaults>
</compile_context>

<pallas_src>
import functools
import math

import jax
import jax.numpy as jnp
from jax import lax
from jax.experimental import pallas as pl
from jax.experimental.pallas import tpu as pltpu


# ------------------------------ tiling helper ------------------------------ #

def _pick_tile(dim, target, align):
    """Largest `align`-aligned divisor of `dim` that is <= target (or full dim)."""
    if dim <= target:
        return dim
    t = (target // align) * align
    while t >= align:
        if dim % t == 0:
            return t
        t -= align
    return dim  # fall back to the whole (un-tiled) dimension


# --------------------------- tiled matmul (+bias) --------------------------- #

def _matmul_bias_kernel(x_ref, w_ref, b_ref, o_ref, acc_ref, *, relu):
    k = pl.program_id(2)

    @pl.when(k == 0)
    def _():
        acc_ref[...] = jnp.zeros_like(acc_ref)

    # x: (tm, tk), w: (tn, tk) in PyTorch (out, in) layout -> contract last dims.
    acc_ref[...] += lax.dot_general(
        x_ref[...], w_ref[...],
        dimension_numbers=(((1,), (1,)), ((), ())),
        preferred_element_type=jnp.float32)

    @pl.when(k == pl.num_programs(2) - 1)
    def _():
        acc = acc_ref[...] + b_ref[...].astype(jnp.float32)
        if relu:
            acc = jnp.maximum(acc, 0.0)
        o_ref[...] = acc.astype(o_ref.dtype)


def matmul_bias(x, w, b, *, relu=False, tm=256, tn=256, tk=512):
    """x: (M, K), w: (Nout, K) [PyTorch layout], b: (Nout,) -> (M, Nout)."""
    M, K = x.shape
    Nout, K2 = w.shape
    assert K == K2
    tm = _pick_tile(M, tm, 8)
    tn = _pick_tile(Nout, tn, 128)
    tk = _pick_tile(K, tk, 128)
    grid = (M // tm, Nout // tn, K // tk)
    itemsize = x.dtype.itemsize
    cost = pl.CostEstimate(
        flops=2 * M * Nout * K,
        transcendentals=0,
        bytes_accessed=(M * K + Nout * K + M * Nout + Nout) * itemsize)
    return pl.pallas_call(
        functools.partial(_matmul_bias_kernel, relu=relu),
        out_shape=jax.ShapeDtypeStruct((M, Nout), x.dtype),
        grid=grid,
        in_specs=[
            pl.BlockSpec((tm, tk), lambda i, j, k: (i, k)),
            pl.BlockSpec((tn, tk), lambda i, j, k: (j, k)),
            pl.BlockSpec((1, tn), lambda i, j, k: (0, j)),
        ],
        out_specs=pl.BlockSpec((tm, tn), lambda i, j, k: (i, j)),
        scratch_shapes=[pltpu.VMEM((tm, tn), jnp.float32)],
        compiler_params=pltpu.CompilerParams(
            dimension_semantics=("parallel", "parallel", "arbitrary")),
        cost_estimate=cost,
    )(x, w, b.reshape(1, Nout))


# ----------------- tiled matmul + bias + residual + LayerNorm ---------------- #

def _matmul_res_ln_kernel(x_ref, w_ref, b_ref, res_ref, g_ref, beta_ref,
                          o_ref, acc_ref, *, eps):
    k = pl.program_id(1)

    @pl.when(k == 0)
    def _():
        acc_ref[...] = jnp.zeros_like(acc_ref)

    acc_ref[...] += lax.dot_general(
        x_ref[...], w_ref[...],
        dimension_numbers=(((1,), (1,)), ((), ())),
        preferred_element_type=jnp.float32)

    @pl.when(k == pl.num_programs(1) - 1)
    def _():
        # epilogue: bias + dropout(identity) + residual add + LayerNorm.
        z = (acc_ref[...]
             + b_ref[...].astype(jnp.float32)
             + res_ref[...].astype(jnp.float32))
        mean = jnp.mean(z, axis=-1, keepdims=True)
        zc = z - mean
        var = jnp.mean(zc * zc, axis=-1, keepdims=True)   # biased, like torch LayerNorm
        inv = lax.rsqrt(var + eps)
        out = zc * inv * g_ref[...].astype(jnp.float32) + beta_ref[...].astype(jnp.float32)
        o_ref[...] = out.astype(o_ref.dtype)


def matmul_bias_residual_layernorm(x, w, b, res, gamma, beta, *,
                                   eps=1e-5, tm=256, tk=512):
    """LayerNorm(res + (x @ w.T + b)).  x: (M, K), w: (E, K), res: (M, E)."""
    M, K = x.shape
    E, K2 = w.shape
    assert K == K2 and res.shape == (M, E)
    tm = _pick_tile(M, tm, 8)
    tk = _pick_tile(K, tk, 128)
    grid = (M // tm, K // tk)
    itemsize = x.dtype.itemsize
    cost = pl.CostEstimate(
        flops=2 * M * E * K + 10 * M * E,
        transcendentals=M,
        bytes_accessed=(M * K + E * K + 2 * M * E + 3 * E) * itemsize)
    return pl.pallas_call(
        functools.partial(_matmul_res_ln_kernel, eps=eps),
        out_shape=jax.ShapeDtypeStruct((M, E), x.dtype),
        grid=grid,
        in_specs=[
            pl.BlockSpec((tm, tk), lambda i, k: (i, k)),
            pl.BlockSpec((E, tk), lambda i, k: (0, k)),
            pl.BlockSpec((1, E), lambda i, k: (0, 0)),
            pl.BlockSpec((tm, E), lambda i, k: (i, 0)),
            pl.BlockSpec((1, E), lambda i, k: (0, 0)),
            pl.BlockSpec((1, E), lambda i, k: (0, 0)),
        ],
        out_specs=pl.BlockSpec((tm, E), lambda i, k: (i, 0)),
        scratch_shapes=[pltpu.VMEM((tm, E), jnp.float32)],
        compiler_params=pltpu.CompilerParams(
            dimension_semantics=("parallel", "arbitrary")),
        cost_estimate=cost,
    )(x, w, b.reshape(1, E), res, gamma.reshape(1, E), beta.reshape(1, E))


# ----------------------- multi-head self-attention -------------------------- #

def _attn_kernel(qkv_ref, o_ref, *, num_heads, d_model, scale):
    # One batch element per grid step; all heads handled inside with static
    # lane slices of the E axis (softmax stats in f32, lane-dense output store).
    E = d_model
    HD = E // num_heads
    qkv = qkv_ref[0]                                     # (L, 3E), native dtype
    outs = []
    for h in range(num_heads):
        q = qkv[:, h * HD:(h + 1) * HD]
        k = qkv[:, E + h * HD: E + (h + 1) * HD]
        v = qkv[:, 2 * E + h * HD: 2 * E + (h + 1) * HD]
        # scores: contract last dims (no k.T transpose), f32 accumulation.
        s = lax.dot_general(
            q, k, dimension_numbers=(((1,), (1,)), ((), ())),
            preferred_element_type=jnp.float32) * scale   # (L, L)
        m = jnp.max(s, axis=-1, keepdims=True)
        p = jnp.exp(s - m)
        denom = jnp.sum(p, axis=-1, keepdims=True)
        p = p * pl.reciprocal(denom, approx=True)
        o = jnp.dot(p.astype(qkv.dtype), v,
                    preferred_element_type=jnp.float32)   # (L, HD)
        outs.append(o)
    o_ref[0] = jnp.concatenate(outs, axis=-1).astype(o_ref.dtype)


def multihead_self_attention(qkv, num_heads):
    """qkv: (N, L, 3E) packed [Q|K|V] along last dim -> (N, L, E)."""
    N, L, E3 = qkv.shape
    E = E3 // 3
    HD = E // num_heads
    scale = 1.0 / math.sqrt(HD)
    itemsize = qkv.dtype.itemsize
    cost = pl.CostEstimate(
        flops=4 * N * num_heads * L * L * HD,
        transcendentals=N * num_heads * L * L,
        bytes_accessed=(N * L * E3 + N * L * E) * itemsize)
    return pl.pallas_call(
        functools.partial(_attn_kernel, num_heads=num_heads, d_model=E, scale=scale),
        out_shape=jax.ShapeDtypeStruct((N, L, E), qkv.dtype),
        grid=(N,),
        in_specs=[pl.BlockSpec((1, L, E3), lambda b: (b, 0, 0))],
        out_specs=pl.BlockSpec((1, L, E), lambda b: (b, 0, 0)),
        compiler_params=pltpu.CompilerParams(
            dimension_semantics=("parallel",)),
        cost_estimate=cost,
    )(qkv)


# --------------------------- EncoderLayer forward --------------------------- #

def encoder_layer_forward(x, params, num_heads):
    """x: (L, N, E) like PyTorch nn.MultiheadAttention (batch_first=False)."""
    L, N, E = x.shape

    # Single layout change to batch-major; every reshape below is a free view,
    # so no further transposes touch the activation slab until the final output.
    xb = jnp.transpose(x, (1, 0, 2))                       # (N, L, E)
    x2d = xb.reshape(N * L, E)                             # batch-major token slab

    # --- Multi-head self-attention ---
    # in_proj weight kept in PyTorch (3E, E) layout; contraction on its last dim.
    qkv = matmul_bias(x2d, params["in_proj_w"], params["in_proj_b"])   # (N*L, 3E)
    attn = multihead_self_attention(qkv.reshape(N, L, 3 * E), num_heads)  # (N, L, E)
    attn2d = attn.reshape(N * L, E)                        # free contiguous view

    # out_proj fused with dropout1(identity) + residual + LayerNorm1.
    out1 = matmul_bias_residual_layernorm(
        attn2d, params["out_proj_w"], params["out_proj_b"],
        x2d, params["ln1_g"], params["ln1_b"])

    # --- Feed-forward ---
    h = matmul_bias(out1, params["ffn_w1"], params["ffn_b1"], relu=True)
    # second FFN linear fused with dropout2(identity) + residual + LayerNorm2.
    out2 = matmul_bias_residual_layernorm(
        h, params["ffn_w2"], params["ffn_b2"],
        out1, params["ln2_g"], params["ln2_b"])

    # Back to (L, N, E) for the PyTorch-compatible interface.
    return jnp.transpose(out2.reshape(N, L, E), (1, 0, 2))


def init_params(key, d_model, num_heads, d_ff, dtype=jnp.float32):
    ks = jax.random.split(key, 6)
    s_in = 1.0 / math.sqrt(d_model)
    s_ff = 1.0 / math.sqrt(d_ff)
    return {
        # nn.MultiheadAttention (PyTorch (out_features, in_features) layout).
        "in_proj_w": jax.random.normal(ks[0], (3 * d_model, d_model), dtype) * s_in,
        "in_proj_b": jnp.zeros((3 * d_model,), dtype),
        "out_proj_w": jax.random.normal(ks[1], (d_model, d_model), dtype) * s_in,
        "out_proj_b": jnp.zeros((d_model,), dtype),
        # FFN: Linear(d_model, d_ff) -> ReLU -> Linear(d_ff, d_model)
        "ffn_w1": jax.random.normal(ks[2], (d_ff, d_model), dtype) * s_in,
        "ffn_b1": jax.random.normal(ks[3], (d_ff,), dtype) * 0.01,
        "ffn_w2": jax.random.normal(ks[4], (d_model, d_ff), dtype) * s_ff,
        "ffn_b2": jnp.zeros((d_model,), dtype) + jax.random.normal(ks[5], (d_model,), dtype) * 0.01,
        # LayerNorms
        "ln1_g": jnp.ones((d_model,), dtype),
        "ln1_b": jnp.zeros((d_model,), dtype),
        "ln2_g": jnp.ones((d_model,), dtype),
        "ln2_b": jnp.zeros((d_model,), dtype),
    }


if __name__ == "__main__":
    # Small shapes consistent with the module's forward (seq, batch, d_model).
    seq, batch = 8, 2
    d_model_s, num_heads_s, d_ff_s = 32, 4, 64

    key = jax.random.PRNGKey(0)
    k_x, k_p = jax.random.split(key)
    x = jax.random.normal(k_x, (seq, batch, d_model_s), jnp.float32)
    params = init_params(k_p, d_model_s, num_heads_s, d_ff_s)

    fwd = jax.jit(functools.partial(encoder_layer_forward, num_heads=num_heads_s))
    out = fwd(x, params)
    jax.block_until_ready(out)
    assert out.shape == (seq, batch, d_model_s)
    assert bool(jnp.all(jnp.isfinite(out)))
    print("KERNEL_OK")
</pallas_src>

<mosaic_0001>
module attributes {stable_mosaic.version = 11 : i64} {
  func.func @_matmul_bias_kernel(%arg0: i32, %arg1: i32, %arg2: i32, %arg3: memref<16x32xf32, #tpu.memory_space<vmem>>, %arg4: memref<96x32xf32, #tpu.memory_space<vmem>>, %arg5: memref<1x96xf32, #tpu.memory_space<vmem>>, %arg6: memref<16x96xf32, #tpu.memory_space<vmem>>, %arg7: memref<16x96xf32, #tpu.memory_space<vmem>>) attributes {dimension_semantics = [#tpu.dimension_semantics<parallel>, #tpu.dimension_semantics<parallel>, #tpu.dimension_semantics<arbitrary>], iteration_bounds = array<i64: 1, 1, 1>, scalar_prefetch = 0 : i64, scratch_operands = 1 : i64, tpu.core_type = #tpu.core_type<tc>, window_params = [{transform_indices = @transform_0, window_bounds = array<i64: 16, 32>}, {transform_indices = @transform_1, window_bounds = array<i64: 96, 32>}, {transform_indices = @transform_2, window_bounds = array<i64: 1, 96>}, {transform_indices = @transform_3, window_bounds = array<i64: 16, 96>}]} {
    %c0_i32 = arith.constant 0 : i32
    %0 = arith.cmpi eq, %arg2, %c0_i32 : i32
    %1 = arith.extui %0 : i1 to i32
    %c0_i32_0 = arith.constant 0 : i32
    %2 = arith.cmpi ne, %1, %c0_i32_0 : i32
    scf.if %2 {
      %cst_10 = arith.constant 0.000000e+00 : f32
      %12 = vector.broadcast %cst_10 : f32 to vector<16x96xf32>
      %c0_11 = arith.constant 0 : index
      %c0_12 = arith.constant 0 : index
      %13 = vector.load %arg7[%c0_11, %c0_12] : memref<16x96xf32, #tpu.memory_space<vmem>>, vector<16x96xf32>
      tpu.vector_store %arg7[%c0_11, %c0_12], %12 {strides = array<i32>} : memref<16x96xf32, #tpu.memory_space<vmem>>, vector<16x96xf32>,
    } else {
    }
    %c0 = arith.constant 0 : index
    %c0_1 = arith.constant 0 : index
    %3 = vector.load %arg7[%c0, %c0_1] : memref<16x96xf32, #tpu.memory_space<vmem>>, vector<16x96xf32>
    %c0_2 = arith.constant 0 : index
    %c0_3 = arith.constant 0 : index
    %4 = vector.load %arg3[%c0_2, %c0_3] : memref<16x32xf32, #tpu.memory_space<vmem>>, vector<16x32xf32>
    %c0_4 = arith.constant 0 : index
    %c0_5 = arith.constant 0 : index
    %5 = vector.load %arg4[%c0_4, %c0_5] : memref<96x32xf32, #tpu.memory_space<vmem>>, vector<96x32xf32>
    %cst = arith.constant dense<0.000000e+00> : vector<16x96xf32>
    %6 = tpu.matmul %4, %5, %cst {dimension_numbers = #tpu.dot_dimension_numbers<[1], [1], [0], [0], [0, 0, 1, 0], [], []>} : vector<16x32xf32>, vector<96x32xf32>, vector<16x96xf32> -> vector<16x96xf32>
    %7 = arith.addf %3, %6 : vector<16x96xf32>
    %c0_6 = arith.constant 0 : index
    %c0_7 = arith.constant 0 : index
    %8 = vector.load %arg7[%c0_6, %c0_7] : memref<16x96xf32, #tpu.memory_space<vmem>>, vector<16x96xf32>
    tpu.vector_store %arg7[%c0_6, %c0_7], %7 {strides = array<i32>} : memref<16x96xf32, #tpu.memory_space<vmem>>, vector<16x96xf32>,
    %c0_i32_8 = arith.constant 0 : i32
    %9 = arith.cmpi eq, %arg2, %c0_i32_8 : i32
    %10 = arith.extui %9 : i1 to i32
    %c0_i32_9 = arith.constant 0 : i32
    %11 = arith.cmpi ne, %10, %c0_i32_9 : i32
    scf.if %11 {
      %c0_10 = arith.constant 0 : index
      %c0_11 = arith.constant 0 : index
      %12 = vector.load %arg7[%c0_10, %c0_11] : memref<16x96xf32, #tpu.memory_space<vmem>>, vector<16x96xf32>
      %c0_12 = arith.constant 0 : index
      %c0_13 = arith.constant 0 : index
      %13 = vector.load %arg5[%c0_12, %c0_13] : memref<1x96xf32, #tpu.memory_space<vmem>>, vector<1x96xf32>
      %14 = vector.broadcast %13 : vector<1x96xf32> to vector<16x96xf32>
      %15 = arith.addf %12, %14 : vector<16x96xf32>
      %c0_14 = arith.constant 0 : index
      %c0_15 = arith.constant 0 : index
      %16 = vector.load %arg6[%c0_14, %c0_15] : memref<16x96xf32, #tpu.memory_space<vmem>>, vector<16x96xf32>
      tpu.vector_store %arg6[%c0_14, %c0_15], %15 {strides = array<i32>} : memref<16x96xf32, #tpu.memory_space<vmem>>, vector<16x96xf32>,
    } else {
    }
    return
  }
  func.func @transform_0(%arg0: i32, %arg1: i32, %arg2: i32) -> (i32, i32) {
    %c0_i32 = arith.constant 0 : i32
    return %arg0, %arg2 : i32, i32
  }
  func.func @transform_1(%arg0: i32, %arg1: i32, %arg2: i32) -> (i32, i32) {
    %c0_i32 = arith.constant 0 : i32
    return %arg1, %arg2 : i32, i32
  }
  func.func @transform_2(%arg0: i32, %arg1: i32, %arg2: i32) -> (i32, i32) {
    %c0_i32 = arith.constant 0 : i32
    %c0_i32_0 = arith.constant 0 : i32
    return %c0_i32, %arg1 : i32, i32
  }
  func.func @transform_3(%arg0: i32, %arg1: i32, %arg2: i32) -> (i32, i32) {
    %c0_i32 = arith.constant 0 : i32
    return %arg0, %arg1 : i32, i32
  }
}

module attributes {stable_mosaic.version = 11 : i64} {
  func.func @_attn_kernel(%arg0: i32, %arg1: memref<1x8x96xf32, #tpu.memory_space<vmem>>, %arg2: memref<1x8x32xf32, #tpu.memory_space<vmem>>) attributes {dimension_semantics = [#tpu.dimension_semantics<parallel>], iteration_bounds = array<i64: 2>, scalar_prefetch = 0 : i64, scratch_operands = 0 : i64, tpu.core_type = #tpu.core_type<tc>, window_params = [{transform_indices = @transform_0, window_bounds = array<i64: 1, 8, 96>}, {transform_indices = @transform_1, window_bounds = array<i64: 1, 8, 32>}]} {
    %c0 = arith.constant 0 : index
    %c0_0 = arith.constant 0 : index
    %c0_1 = arith.constant 0 : index
    %0 = vector.load %arg1[%c0, %c0_0, %c0_1] : memref<1x8x96xf32, #tpu.memory_space<vmem>>, vector<1x8x96xf32>
    %1 = vector.shape_cast %0 : vector<1x8x96xf32> to vector<8x96xf32>
    %2 = vector.extract_strided_slice %1 {offsets = [0, 0], sizes = [8, 8], strides = [1, 1]} : vector<8x96xf32> to vector<8x8xf32>
    %3 = vector.extract_strided_slice %1 {offsets = [0, 32], sizes = [8, 8], strides = [1, 1]} : vector<8x96xf32> to vector<8x8xf32>
    %4 = vector.extract_strided_slice %1 {offsets = [0, 64], sizes = [8, 8], strides = [1, 1]} : vector<8x96xf32> to vector<8x8xf32>
    %cst = arith.constant dense<0.000000e+00> : vector<8x8xf32>
    %5 = tpu.matmul %2, %3, %cst {dimension_numbers = #tpu.dot_dimension_numbers<[1], [1], [0], [0], [0, 0, 1, 0], [], []>} : vector<8x8xf32>, vector<8x8xf32>, vector<8x8xf32> -> vector<8x8xf32>
    %cst_2 = arith.constant 0.353553385 : f32
    %6 = vector.broadcast %cst_2 : f32 to vector<8x8xf32>
    %7 = arith.mulf %5, %6 : vector<8x8xf32>
    %cst_3 = arith.constant dense<0xFF800000> : vector<8xf32>
    %8 = vector.multi_reduction <maximumf>, %7, %cst_3 [1] : vector<8x8xf32> to vector<8xf32>
    %9 = vector.shape_cast %8 : vector<8xf32> to vector<8x1xf32>
    %10 = vector.broadcast %9 : vector<8x1xf32> to vector<8x8xf32>
    %11 = arith.subf %7, %10 : vector<8x8xf32>
    %12 = math.exp %11 : vector<8x8xf32>
    %cst_4 = arith.constant dense<0.000000e+00> : vector<8xf32>
    %13 = vector.multi_reduction <add>, %12, %cst_4 [1] : vector<8x8xf32> to vector<8xf32>
    %14 = vector.shape_cast %13 : vector<8xf32> to vector<8x1xf32>
    %15 = tpu.reciprocal %14 {approx = true} : vector<8x1xf32> -> vector<8x1xf32>
    %16 = vector.broadcast %15 : vector<8x1xf32> to vector<8x8xf32>
    %17 = arith.mulf %12, %16 : vector<8x8xf32>
    %cst_5 = arith.constant dense<0.000000e+00> : vector<8x8xf32>
    %18 = tpu.matmul %17, %4, %cst_5 {dimension_numbers = #tpu.dot_dimension_numbers<[1], [0], [0], [1], [0, 0, 1, 1], [], []>} : vector<8x8xf32>, vector<8x8xf32>, vector<8x8xf32> -> vector<8x8xf32>
    %19 = vector.extract_strided_slice %1 {offsets = [0, 8], sizes = [8, 8], strides = [1, 1]} : vector<8x96xf32> to vector<8x8xf32>
    %20 = vector.extract_strided_slice %1 {offsets = [0, 40], sizes = [8, 8], strides = [1, 1]} : vector<8x96xf32> to vector<8x8xf32>
    %21 = vector.extract_strided_slice %1 {offsets = [0, 72], sizes = [8, 8], strides = [1, 1]} : vector<8x96xf32> to vector<8x8xf32>
    %cst_6 = arith.constant dense<0.000000e+00> : vector<8x8xf32>
    %22 = tpu.matmul %19, %20, %cst_6 {dimension_numbers = #tpu.dot_dimension_numbers<[1], [1], [0], [0], [0, 0, 1, 0], [], []>} : vector<8x8xf32>, vector<8x8xf32>, vector<8x8xf32> -> vector<8x8xf32>
    %cst_7 = arith.constant 0.353553385 : f32
    %23 = vector.broadcast %cst_7 : f32 to vector<8x8xf32>
    %24 = arith.mulf %22, %23 : vector<8x8xf32>
    %cst_8 = arith.constant dense<0xFF800000> : vector<8xf32>
    %25 = vector.multi_reduction <maximumf>, %24, %cst_8 [1] : vector<8x8xf32> to vector<8xf32>
    %26 = vector.shape_cast %25 : vector<8xf32> to vector<8x1xf32>
    %27 = vector.broadcast %26 : vector<8x1xf32> to vector<8x8xf32>
    %28 = arith.subf %24, %27 : vector<8x8xf32>
    %29 = math.exp %28 : vector<8x8xf32>
    %cst_9 = arith.constant dense<0.000000e+00> : vector<8xf32>
    %30 = vector.multi_reduction <add>, %29, %cst_9 [1] : vector<8x8xf32> to vector<8xf32>
    %31 = vector.shape_cast %30 : vector<8xf32> to vector<8x1xf32>
    %32 = tpu.reciprocal %31 {approx = true} : vector<8x1xf32> -> vector<8x1xf32>
    %33 = vector.broadcast %32 : vector<8x1xf32> to vector<8x8xf32>
    %34 = arith.mulf %29, %33 : vector<8x8xf32>
    %cst_10 = arith.constant dense<0.000000e+00> : vector<8x8xf32>
    %35 = tpu.matmul %34, %21, %cst_10 {dimension_numbers = #tpu.dot_dimension_numbers<[1], [0], [0], [1], [0, 0, 1, 1], [], []>} : vector<8x8xf32>, vector<8x8xf32>, vector<8x8xf32> -> vector<8x8xf32>
    %36 = vector.extract_strided_slice %1 {offsets = [0, 16], sizes = [8, 8], strides = [1, 1]} : vector<8x96xf32> to vector<8x8xf32>
    %37 = vector.extract_strided_slice %1 {offsets = [0, 48], sizes = [8, 8], strides = [1, 1]} : vector<8x96xf32> to vector<8x8xf32>
    %38 = vector.extract_strided_slice %1 {offsets = [0, 80], sizes = [8, 8], strides = [1, 1]} : vector<8x96xf32> to vector<8x8xf32>
    %cst_11 = arith.constant dense<0.000000e+00> : vector<8x8xf32>
    %39 = tpu.matmul %36, %37, %cst_11 {dimension_numbers = #tpu.dot_dimension_numbers<[1], [1], [0], [0], [0, 0, 1, 0], [], []>} : vector<8x8xf32>, vector<8x8xf32>, vector<8x8xf32> -> vector<8x8xf32>
    %cst_12 = arith.constant 0.353553385 : f32
    %40 = vector.broadcast %cst_12 : f32 to vector<8x8xf32>
    %41 = arith.mulf %39, %40 : vector<8x8xf32>
    %cst_13 = arith.constant dense<0xFF800000> : vector<8xf32>
    %42 = vector.multi_reduction <maximumf>, %41, %cst_13 [1] : vector<8x8xf32> to vector<8xf32>
    %43 = vector.shape_cast %42 : vector<8xf32> to vector<8x1xf32>
    %44 = vector.broadcast %43 : vector<8x1xf32> to vector<8x8xf32>
    %45 = arith.subf %41, %44 : vector<8x8xf32>
    %46 = math.exp %45 : vector<8x8xf32>
    %cst_14 = arith.constant dense<0.000000e+00> : vector<8xf32>
    %47 = vector.multi_reduction <add>, %46, %cst_14 [1] : vector<8x8xf32> to vector<8xf32>
    %48 = vector.shape_cast %47 : vector<8xf32> to vector<8x1xf32>
    %49 = tpu.reciprocal %48 {approx = true} : vector<8x1xf32> -> vector<8x1xf32>
    %50 = vector.broadcast %49 : vector<8x1xf32> to vector<8x8xf32>
    %51 = arith.mulf %46, %50 : vector<8x8xf32>
    %cst_15 = arith.constant dense<0.000000e+00> : vector<8x8xf32>
    %52 = tpu.matmul %51, %38, %cst_15 {dimension_numbers = #tpu.dot_dimension_numbers<[1], [0], [0], [1], [0, 0, 1, 1], [], []>} : vector<8x8xf32>, vector<8x8xf32>, vector<8x8xf32> -> vector<8x8xf32>
    %53 = vector.extract_strided_slice %1 {offsets = [0, 24], sizes = [8, 8], strides = [1, 1]} : vector<8x96xf32> to vector<8x8xf32>
    %54 = vector.extract_strided_slice %1 {offsets = [0, 56], sizes = [8, 8], strides = [1, 1]} : vector<8x96xf32> to vector<8x8xf32>
    %55 = vector.extract_strided_slice %1 {offsets = [0, 88], sizes = [8, 8], strides = [1, 1]} : vector<8x96xf32> to vector<8x8xf32>
    %cst_16 = arith.constant dense<0.000000e+00> : vector<8x8xf32>
    %56 = tpu.matmul %53, %54, %cst_16 {dimension_numbers = #tpu.dot_dimension_numbers<[1], [1], [0], [0], [0, 0, 1, 0], [], []>} : vector<8x8xf32>, vector<8x8xf32>, vector<8x8xf32> -> vector<8x8xf32>
    %cst_17 = arith.constant 0.353553385 : f32
    %57 = vector.broadcast %cst_17 : f32 to vector<8x8xf32>
    %58 = arith.mulf %56, %57 : vector<8x8xf32>
    %cst_18 = arith.constant dense<0xFF800000> : vector<8xf32>
    %59 = vector.multi_reduction <maximumf>, %58, %cst_18 [1] : vector<8x8xf32> to vector<8xf32>
    %60 = vector.shape_cast %59 : vector<8xf32> to vector<8x1xf32>
    %61 = vector.broadcast %60 : vector<8x1xf32> to vector<8x8xf32>
    %62 = arith.subf %58, %61 : vector<8x8xf32>
    %63 = math.exp %62 : vector<8x8xf32>
    %cst_19 = arith.constant dense<0.000000e+00> : vector<8xf32>
    %64 = vector.multi_reduction <add>, %63, %cst_19 [1] : vector<8x8xf32> to vector<8xf32>
    %65 = vector.shape_cast %64 : vector<8xf32> to vector<8x1xf32>
    %66 = tpu.reciprocal %65 {approx = true} : vector<8x1xf32> -> vector<8x1xf32>
    %67 = vector.broadcast %66 : vector<8x1xf32> to vector<8x8xf32>
    %68 = arith.mulf %63, %67 : vector<8x8xf32>
    %cst_20 = arith.constant dense<0.000000e+00> : vector<8x8xf32>
    %69 = tpu.matmul %68, %55, %cst_20 {dimension_numbers = #tpu.dot_dimension_numbers<[1], [0], [0], [1], [0, 0, 1, 1], [], []>} : vector<8x8xf32>, vector<8x8xf32>, vector<8x8xf32> -> vector<8x8xf32>
    %70 = tpu.concatenate %18, %35, %52, %69 in 1 : vector<8x8xf32>, vector<8x8xf32>, vector<8x8xf32>, vector<8x8xf32> -> vector<8x32xf32>
    %c0_21 = arith.constant 0 : index
    %c0_22 = arith.constant 0 : index
    %c0_23 = arith.constant 0 : index
    %71 = vector.load %arg2[%c0_21, %c0_22, %c0_23] : memref<1x8x32xf32, #tpu.memory_space<vmem>>, vector<1x8x32xf32>
    %72 = vector.shape_cast %71 : vector<1x8x32xf32> to vector<8x32xf32>
    %73 = vector.shape_cast %70 : vector<8x32xf32> to vector<1x8x32xf32>
    tpu.vector_store %arg2[%c0_21, %c0_22, %c0_23], %73 {strides = array<i32>} : memref<1x8x32xf32, #tpu.memory_space<vmem>>, vector<1x8x32xf32>,
    return
  }
  func.func @transform_0(%arg0: i32) -> (i32, i32, i32) {
    %c0_i32 = arith.constant 0 : i32
    %c0_i32_0 = arith.constant 0 : i32
    %c0_i32_1 = arith.constant 0 : i32
    return %arg0, %c0_i32, %c0_i32_0 : i32, i32, i32
  }
  func.func @transform_1(%arg0: i32) -> (i32, i32, i32) {
    %c0_i32 = arith.constant 0 : i32
    %c0_i32_0 = arith.constant 0 : i32
    %c0_i32_1 = arith.constant 0 : i32
    return %arg0, %c0_i32, %c0_i32_0 : i32, i32, i32
  }
}

module attributes {stable_mosaic.version = 11 : i64} {
  func.func @_matmul_res_ln_kernel(%arg0: i32, %arg1: i32, %arg2: memref<16x32xf32, #tpu.memory_space<vmem>>, %arg3: memref<32x32xf32, #tpu.memory_space<vmem>>, %arg4: memref<1x32xf32, #tpu.memory_space<vmem>>, %arg5: memref<16x32xf32, #tpu.memory_space<vmem>>, %arg6: memref<1x32xf32, #tpu.memory_space<vmem>>, %arg7: memref<1x32xf32, #tpu.memory_space<vmem>>, %arg8: memref<16x32xf32, #tpu.memory_space<vmem>>, %arg9: memref<16x32xf32, #tpu.memory_space<vmem>>) attributes {dimension_semantics = [#tpu.dimension_semantics<parallel>, #tpu.dimension_semantics<arbitrary>], iteration_bounds = array<i64: 1, 1>, scalar_prefetch = 0 : i64, scratch_operands = 1 : i64, tpu.core_type = #tpu.core_type<tc>, window_params = [{transform_indices = @transform_0, window_bounds = array<i64: 16, 32>}, {transform_indices = @transform_1, window_bounds = array<i64: 32, 32>}, {pipeline_mode = #tpu.pipeline_mode<synchronous>, transform_indices = @transform_2, window_bounds = array<i64: 1, 32>}, {transform_indices = @transform_3, window_bounds = array<i64: 16, 32>}, {pipeline_mode = #tpu.pipeline_mode<synchronous>, transform_indices = @transform_4, window_bounds = array<i64: 1, 32>}, {pipeline_mode = #tpu.pipeline_mode<synchronous>, transform_indices = @transform_5, window_bounds = array<i64: 1, 32>}, {transform_indices = @transform_6, window_bounds = array<i64: 16, 32>}]} {
    %c0_i32 = arith.constant 0 : i32
    %0 = arith.cmpi eq, %arg1, %c0_i32 : i32
    %1 = arith.extui %0 : i1 to i32
    %c0_i32_0 = arith.constant 0 : i32
    %2 = arith.cmpi ne, %1, %c0_i32_0 : i32
    scf.if %2 {
      %cst_10 = arith.constant 0.000000e+00 : f32
      %12 = vector.broadcast %cst_10 : f32 to vector<16x32xf32>
      %c0_11 = arith.constant 0 : index
      %c0_12 = arith.constant 0 : index
      %13 = vector.load %arg9[%c0_11, %c0_12] : memref<16x32xf32, #tpu.memory_space<vmem>>, vector<16x32xf32>
      tpu.vector_store %arg9[%c0_11, %c0_12], %12 {strides = array<i32>} : memref<16x32xf32, #tpu.memory_space<vmem>>, vector<16x32xf32>,
    } else {
    }
    %c0 = arith.constant 0 : index
    %c0_1 = arith.constant 0 : index
    %3 = vector.load %arg9[%c0, %c0_1] : memref<16x32xf32, #tpu.memory_space<vmem>>, vector<16x32xf32>
    %c0_2 = arith.constant 0 : index
    %c0_3 = arith.constant 0 : index
    %4 = vector.load %arg2[%c0_2, %c0_3] : memref<16x32xf32, #tpu.memory_space<vmem>>, vector<16x32xf32>
    %c0_4 = arith.constant 0 : index
    %c0_5 = arith.constant 0 : index
    %5 = vector.load %arg3[%c0_4, %c0_5] : memref<32x32xf32, #tpu.memory_space<vmem>>, vector<32x32xf32>
    %cst = arith.constant dense<0.000000e+00> : vector<16x32xf32>
    %6 = tpu.matmul %4, %5, %cst {dimension_numbers = #tpu.dot_dimension_numbers<[1], [1], [0], [0], [0, 0, 1, 0], [], []>} : vector<16x32xf32>, vector<32x32xf32>, vector<16x32xf32> -> vector<16x32xf32>
    %7 = arith.addf %3, %6 : vector<16x32xf32>
    %c0_6 = arith.constant 0 : index
    %c0_7 = arith.constant 0 : index
    %8 = vector.load %arg9[%c0_6, %c0_7] : memref<16x32xf32, #tpu.memory_space<vmem>>, vector<16x32xf32>
    tpu.vector_store %arg9[%c0_6, %c0_7], %7 {strides = array<i32>} : memref<16x32xf32, #tpu.memory_space<vmem>>, vector<16x32xf32>,
    %c0_i32_8 = arith.constant 0 : i32
    %9 = arith.cmpi eq, %arg1, %c0_i32_8 : i32
    %10 = arith.extui %9 : i1 to i32
    %c0_i32_9 = arith.constant 0 : i32
    %11 = arith.cmpi ne, %10, %c0_i32_9 : i32
    scf.if %11 {
      %c0_10 = arith.constant 0 : index
      %c0_11 = arith.constant 0 : index
      %12 = vector.load %arg9[%c0_10, %c0_11] : memref<16x32xf32, #tpu.memory_space<vmem>>, vector<16x32xf32>
      %c0_12 = arith.constant 0 : index
      %c0_13 = arith.constant 0 : index
      %13 = vector.load %arg4[%c0_12, %c0_13] : memref<1x32xf32, #tpu.memory_space<vmem>>, vector<1x32xf32>
      %14 = vector.broadcast %13 : vector<1x32xf32> to vector<16x32xf32>
      %15 = arith.addf %12, %14 : vector<16x32xf32>
      %c0_14 = arith.constant 0 : index
      %c0_15 = arith.constant 0 : index
      %16 = vector.load %arg5[%c0_14, %c0_15] : memref<16x32xf32, #tpu.memory_space<vmem>>, vector<16x32xf32>
      %17 = arith.addf %15, %16 : vector<16x32xf32>
      %cst_16 = arith.constant dense<0.000000e+00> : vector<16xf32>
      %18 = vector.multi_reduction <add>, %17, %cst_16 [1] : vector<16x32xf32> to vector<16xf32>
      %19 = vector.shape_cast %18 : vector<16xf32> to vector<16x1xf32>
      %cst_17 = arith.constant 3.200000e+01 : f32
      %20 = vector.broadcast %cst_17 : f32 to vector<16x1xf32>
      %21 = arith.divf %19, %20 : vector<16x1xf32>
      %22 = vector.broadcast %21 : vector<16x1xf32> to vector<16x32xf32>
      %23 = arith.subf %17, %22 : vector<16x32xf32>
      %24 = arith.mulf %23, %23 : vector<16x32xf32>
      %cst_18 = arith.constant dense<0.000000e+00> : vector<16xf32>
      %25 = vector.multi_reduction <add>, %24, %cst_18 [1] : vector<16x32xf32> to vector<16xf32>
      %26 = vector.shape_cast %25 : vector<16xf32> to vector<16x1xf32>
      %cst_19 = arith.constant 3.200000e+01 : f32
      %27 = vector.broadcast %cst_19 : f32 to vector<16x1xf32>
      %28 = arith.divf %26, %27 : vector<16x1xf32>
      %cst_20 = arith.constant 9.99999974E-6 : f32
      %29 = vector.broadcast %cst_20 : f32 to vector<16x1xf32>
      %30 = arith.addf %28, %29 : vector<16x1xf32>
      %31 = math.rsqrt %30 : vector<16x1xf32>
      %32 = vector.broadcast %31 : vector<16x1xf32> to vector<16x32xf32>
      %33 = arith.mulf %23, %32 : vector<16x32xf32>
      %c0_21 = arith.constant 0 : index
      %c0_22 = arith.constant 0 : index
      %34 = vector.load %arg6[%c0_21, %c0_22] : memref<1x32xf32, #tpu.memory_space<vmem>>, vector<1x32xf32>
      %35 = vector.broadcast %34 : vector<1x32xf32> to vector<16x32xf32>
      %36 = arith.mulf %33, %35 : vector<16x32xf32>
      %c0_23 = arith.constant 0 : index
      %c0_24 = arith.constant 0 : index
      %37 = vector.load %arg7[%c0_23, %c0_24] : memref<1x32xf32, #tpu.memory_space<vmem>>, vector<1x32xf32>
      %38 = vector.broadcast %37 : vector<1x32xf32> to vector<16x32xf32>
      %39 = arith.addf %36, %38 : vector<16x32xf32>
      %c0_25 = arith.constant 0 : index
      %c0_26 = arith.constant 0 : index
      %40 = vector.load %arg8[%c0_25, %c0_26] : memref<16x32xf32, #tpu.memory_space<vmem>>, vector<16x32xf32>
      tpu.vector_store %arg8[%c0_25, %c0_26], %39 {strides = array<i32>} : memref<16x32xf32, #tpu.memory_space<vmem>>, vector<16x32xf32>,
    } else {
    }
    return
  }
  func.func @transform_0(%arg0: i32, %arg1: i32) -> (i32, i32) {
    %c0_i32 = arith.constant 0 : i32
    return %arg0, %arg1 : i32, i32
  }
  func.func @transform_1(%arg0: i32, %arg1: i32) -> (i32, i32) {
    %c0_i32 = arith.constant 0 : i32
    %c0_i32_0 = arith.constant 0 : i32
    return %c0_i32, %arg1 : i32, i32
  }
  func.func @transform_2(%arg0: i32, %arg1: i32) -> (i32, i32) {
    %c0_i32 = arith.constant 0 : i32
    %c0_i32_0 = arith.constant 0 : i32
    %c0_i32_1 = arith.constant 0 : i32
    return %c0_i32, %c0_i32_0 : i32, i32
  }
  func.func @transform_3(%arg0: i32, %arg1: i32) -> (i32, i32) {
    %c0_i32 = arith.constant 0 : i32
    %c0_i32_0 = arith.constant 0 : i32
    return %arg0, %c0_i32 : i32, i32
  }
  func.func @transform_4(%arg0: i32, %arg1: i32) -> (i32, i32) {
    %c0_i32 = arith.constant 0 : i32
    %c0_i32_0 = arith.constant 0 : i32
    %c0_i32_1 = arith.constant 0 : i32
    return %c0_i32, %c0_i32_0 : i32, i32
  }
  func.func @transform_5(%arg0: i32, %arg1: i32) -> (i32, i32) {
    %c0_i32 = arith.constant 0 : i32
    %c0_i32_0 = arith.constant 0 : i32
    %c0_i32_1 = arith.constant 0 : i32
    return %c0_i32, %c0_i32_0 : i32, i32
  }
  func.func @transform_6(%arg0: i32, %arg1: i32) -> (i32, i32) {
    %c0_i32 = arith.constant 0 : i32
    %c0_i32_0 = arith.constant 0 : i32
    return %arg0, %c0_i32 : i32, i32
  }
}

module attributes {stable_mosaic.version = 11 : i64} {
  func.func @_matmul_bias_kernel(%arg0: i32, %arg1: i32, %arg2: i32, %arg3: memref<16x32xf32, #tpu.memory_space<vmem>>, %arg4: memref<64x32xf32, #tpu.memory_space<vmem>>, %arg5: memref<1x64xf32, #tpu.memory_space<vmem>>, %arg6: memref<16x64xf32, #tpu.memory_space<vmem>>, %arg7: memref<16x64xf32, #tpu.memory_space<vmem>>) attributes {dimension_semantics = [#tpu.dimension_semantics<parallel>, #tpu.dimension_semantics<parallel>, #tpu.dimension_semantics<arbitrary>], iteration_bounds = array<i64: 1, 1, 1>, scalar_prefetch = 0 : i64, scratch_operands = 1 : i64, tpu.core_type = #tpu.core_type<tc>, window_params = [{transform_indices = @transform_0, window_bounds = array<i64: 16, 32>}, {transform_indices = @transform_1, window_bounds = array<i64: 64, 32>}, {transform_indices = @transform_2, window_bounds = array<i64: 1, 64>}, {transform_indices = @transform_3, window_bounds = array<i64: 16, 64>}]} {
    %c0_i32 = arith.constant 0 : i32
    %0 = arith.cmpi eq, %arg2, %c0_i32 : i32
    %1 = arith.extui %0 : i1 to i32
    %c0_i32_0 = arith.constant 0 : i32
    %2 = arith.cmpi ne, %1, %c0_i32_0 : i32
    scf.if %2 {
      %cst_10 = arith.constant 0.000000e+00 : f32
      %12 = vector.broadcast %cst_10 : f32 to vector<16x64xf32>
      %c0_11 = arith.constant 0 : index
      %c0_12 = arith.constant 0 : index
      %13 = vector.load %arg7[%c0_11, %c0_12] : memref<16x64xf32, #tpu.memory_space<vmem>>, vector<16x64xf32>
      tpu.vector_store %arg7[%c0_11, %c0_12], %12 {strides = array<i32>} : memref<16x64xf32, #tpu.memory_space<vmem>>, vector<16x64xf32>,
    } else {
    }
    %c0 = arith.constant 0 : index
    %c0_1 = arith.constant 0 : index
    %3 = vector.load %arg7[%c0, %c0_1] : memref<16x64xf32, #tpu.memory_space<vmem>>, vector<16x64xf32>
    %c0_2 = arith.constant 0 : index
    %c0_3 = arith.constant 0 : index
    %4 = vector.load %arg3[%c0_2, %c0_3] : memref<16x32xf32, #tpu.memory_space<vmem>>, vector<16x32xf32>
    %c0_4 = arith.constant 0 : index
    %c0_5 = arith.constant 0 : index
    %5 = vector.load %arg4[%c0_4, %c0_5] : memref<64x32xf32, #tpu.memory_space<vmem>>, vector<64x32xf32>
    %cst = arith.constant dense<0.000000e+00> : vector<16x64xf32>
    %6 = tpu.matmul %4, %5, %cst {dimension_numbers = #tpu.dot_dimension_numbers<[1], [1], [0], [0], [0, 0, 1, 0], [], []>} : vector<16x32xf32>, vector<64x32xf32>, vector<16x64xf32> -> vector<16x64xf32>
    %7 = arith.addf %3, %6 : vector<16x64xf32>
    %c0_6 = arith.constant 0 : index
    %c0_7 = arith.constant 0 : index
    %8 = vector.load %arg7[%c0_6, %c0_7] : memref<16x64xf32, #tpu.memory_space<vmem>>, vector<16x64xf32>
    tpu.vector_store %arg7[%c0_6, %c0_7], %7 {strides = array<i32>} : memref<16x64xf32, #tpu.memory_space<vmem>>, vector<16x64xf32>,
    %c0_i32_8 = arith.constant 0 : i32
    %9 = arith.cmpi eq, %arg2, %c0_i32_8 : i32
    %10 = arith.extui %9 : i1 to i32
    %c0_i32_9 = arith.constant 0 : i32
    %11 = arith.cmpi ne, %10, %c0_i32_9 : i32
    scf.if %11 {
      %c0_10 = arith.constant 0 : index
      %c0_11 = arith.constant 0 : index
      %12 = vector.load %arg7[%c0_10, %c0_11] : memref<16x64xf32, #tpu.memory_space<vmem>>, vector<16x64xf32>
      %c0_12 = arith.constant 0 : index
      %c0_13 = arith.constant 0 : index
      %13 = vector.load %arg5[%c0_12, %c0_13] : memref<1x64xf32, #tpu.memory_space<vmem>>, vector<1x64xf32>
      %14 = vector.broadcast %13 : vector<1x64xf32> to vector<16x64xf32>
      %15 = arith.addf %12, %14 : vector<16x64xf32>
      %cst_14 = arith.constant 0.000000e+00 : f32
      %16 = vector.broadcast %cst_14 : f32 to vector<16x64xf32>
      %17 = arith.maximumf %15, %16 : vector<16x64xf32>
      %c0_15 = arith.constant 0 : index
      %c0_16 = arith.constant 0 : index
      %18 = vector.load %arg6[%c0_15, %c0_16] : memref<16x64xf32, #tpu.memory_space<vmem>>, vector<16x64xf32>
      tpu.vector_store %arg6[%c0_15, %c0_16], %17 {strides = array<i32>} : memref<16x64xf32, #tpu.memory_space<vmem>>, vector<16x64xf32>,
    } else {
    }
    return
  }
  func.func @transform_0(%arg0: i32, %arg1: i32, %arg2: i32) -> (i32, i32) {
    %c0_i32 = arith.constant 0 : i32
    return %arg0, %arg2 : i32, i32
  }
  func.func @transform_1(%arg0: i32, %arg1: i32, %arg2: i32) -> (i32, i32) {
    %c0_i32 = arith.constant 0 : i32
    return %arg1, %arg2 : i32, i32
  }
  func.func @transform_2(%arg0: i32, %arg1: i32, %arg2: i32) -> (i32, i32) {
    %c0_i32 = arith.constant 0 : i32
    %c0_i32_0 = arith.constant 0 : i32
    return %c0_i32, %arg1 : i32, i32
  }
  func.func @transform_3(%arg0: i32, %arg1: i32, %arg2: i32) -> (i32, i32) {
    %c0_i32 = arith.constant 0 : i32
    return %arg0, %arg1 : i32, i32
  }
}

module attributes {stable_mosaic.version = 11 : i64} {
  func.func @_matmul_res_ln_kernel(%arg0: i32, %arg1: i32, %arg2: memref<16x64xf32, #tpu.memory_space<vmem>>, %arg3: memref<32x64xf32, #tpu.memory_space<vmem>>, %arg4: memref<1x32xf32, #tpu.memory_space<vmem>>, %arg5: memref<16x32xf32, #tpu.memory_space<vmem>>, %arg6: memref<1x32xf32, #tpu.memory_space<vmem>>, %arg7: memref<1x32xf32, #tpu.memory_space<vmem>>, %arg8: memref<16x32xf32, #tpu.memory_space<vmem>>, %arg9: memref<16x32xf32, #tpu.memory_space<vmem>>) attributes {dimension_semantics = [#tpu.dimension_semantics<parallel>, #tpu.dimension_semantics<arbitrary>], iteration_bounds = array<i64: 1, 1>, scalar_prefetch = 0 : i64, scratch_operands = 1 : i64, tpu.core_type = #tpu.core_type<tc>, window_params = [{transform_indices = @transform_0, window_bounds = array<i64: 16, 64>}, {transform_indices = @transform_1, window_bounds = array<i64: 32, 64>}, {pipeline_mode = #tpu.pipeline_mode<synchronous>, transform_indices = @transform_2, window_bounds = array<i64: 1, 32>}, {transform_indices = @transform_3, window_bounds = array<i64: 16, 32>}, {pipeline_mode = #tpu.pipeline_mode<synchronous>, transform_indices = @transform_4, window_bounds = array<i64: 1, 32>}, {pipeline_mode = #tpu.pipeline_mode<synchronous>, transform_indices = @transform_5, window_bounds = array<i64: 1, 32>}, {transform_indices = @transform_6, window_bounds = array<i64: 16, 32>}]} {
    %c0_i32 = arith.constant 0 : i32
    %0 = arith.cmpi eq, %arg1, %c0_i32 : i32
    %1 = arith.extui %0 : i1 to i32
    %c0_i32_0 = arith.constant 0 : i32
    %2 = arith.cmpi ne, %1, %c0_i32_0 : i32
    scf.if %2 {
      %cst_10 = arith.constant 0.000000e+00 : f32
      %12 = vector.broadcast %cst_10 : f32 to vector<16x32xf32>
      %c0_11 = arith.constant 0 : index
      %c0_12 = arith.constant 0 : index
      %13 = vector.load %arg9[%c0_11, %c0_12] : memref<16x32xf32, #tpu.memory_space<vmem>>, vector<16x32xf32>
      tpu.vector_store %arg9[%c0_11, %c0_12], %12 {strides = array<i32>} : memref<16x32xf32, #tpu.memory_space<vmem>>, vector<16x32xf32>,
    } else {
    }
    %c0 = arith.constant 0 : index
    %c0_1 = arith.constant 0 : index
    %3 = vector.load %arg9[%c0, %c0_1] : memref<16x32xf32, #tpu.memory_space<vmem>>, vector<16x32xf32>
    %c0_2 = arith.constant 0 : index
    %c0_3 = arith.constant 0 : index
    %4 = vector.load %arg2[%c0_2, %c0_3] : memref<16x64xf32, #tpu.memory_space<vmem>>, vector<16x64xf32>
    %c0_4 = arith.constant 0 : index
    %c0_5 = arith.constant 0 : index
    %5 = vector.load %arg3[%c0_4, %c0_5] : memref<32x64xf32, #tpu.memory_space<vmem>>, vector<32x64xf32>
    %cst = arith.constant dense<0.000000e+00> : vector<16x32xf32>
    %6 = tpu.matmul %4, %5, %cst {dimension_numbers = #tpu.dot_dimension_numbers<[1], [1], [0], [0], [0, 0, 1, 0], [], []>} : vector<16x64xf32>, vector<32x64xf32>, vector<16x32xf32> -> vector<16x32xf32>
    %7 = arith.addf %3, %6 : vector<16x32xf32>
    %c0_6 = arith.constant 0 : index
    %c0_7 = arith.constant 0 : index
    %8 = vector.load %arg9[%c0_6, %c0_7] : memref<16x32xf32, #tpu.memory_space<vmem>>, vector<16x32xf32>
    tpu.vector_store %arg9[%c0_6, %c0_7], %7 {strides = array<i32>} : memref<16x32xf32, #tpu.memory_space<vmem>>, vector<16x32xf32>,
    %c0_i32_8 = arith.constant 0 : i32
    %9 = arith.cmpi eq, %arg1, %c0_i32_8 : i32
    %10 = arith.extui %9 : i1 to i32
    %c0_i32_9 = arith.constant 0 : i32
    %11 = arith.cmpi ne, %10, %c0_i32_9 : i32
    scf.if %11 {
      %c0_10 = arith.constant 0 : index
      %c0_11 = arith.constant 0 : index
      %12 = vector.load %arg9[%c0_10, %c0_11] : memref<16x32xf32, #tpu.memory_space<vmem>>, vector<16x32xf32>
      %c0_12 = arith.constant 0 : index
      %c0_13 = arith.constant 0 : index
      %13 = vector.load %arg4[%c0_12, %c0_13] : memref<1x32xf32, #tpu.memory_space<vmem>>, vector<1x32xf32>
      %14 = vector.broadcast %13 : vector<1x32xf32> to vector<16x32xf32>
      %15 = arith.addf %12, %14 : vector<16x32xf32>
      %c0_14 = arith.constant 0 : index
      %c0_15 = arith.constant 0 : index
      %16 = vector.load %arg5[%c0_14, %c0_15] : memref<16x32xf32, #tpu.memory_space<vmem>>, vector<16x32xf32>
      %17 = arith.addf %15, %16 : vector<16x32xf32>
      %cst_16 = arith.constant dense<0.000000e+00> : vector<16xf32>
      %18 = vector.multi_reduction <add>, %17, %cst_16 [1] : vector<16x32xf32> to vector<16xf32>
      %19 = vector.shape_cast %18 : vector<16xf32> to vector<16x1xf32>
      %cst_17 = arith.constant 3.200000e+01 : f32
      %20 = vector.broadcast %cst_17 : f32 to vector<16x1xf32>
      %21 = arith.divf %19, %20 : vector<16x1xf32>
      %22 = vector.broadcast %21 : vector<16x1xf32> to vector<16x32xf32>
      %23 = arith.subf %17, %22 : vector<16x32xf32>
      %24 = arith.mulf %23, %23 : vector<16x32xf32>
      %cst_18 = arith.constant dense<0.000000e+00> : vector<16xf32>
      %25 = vector.multi_reduction <add>, %24, %cst_18 [1] : vector<16x32xf32> to vector<16xf32>
      %26 = vector.shape_cast %25 : vector<16xf32> to vector<16x1xf32>
      %cst_19 = arith.constant 3.200000e+01 : f32
      %27 = vector.broadcast %cst_19 : f32 to vector<16x1xf32>
      %28 = arith.divf %26, %27 : vector<16x1xf32>
      %cst_20 = arith.constant 9.99999974E-6 : f32
      %29 = vector.broadcast %cst_20 : f32 to vector<16x1xf32>
      %30 = arith.addf %28, %29 : vector<16x1xf32>
      %31 = math.rsqrt %30 : vector<16x1xf32>
      %32 = vector.broadcast %31 : vector<16x1xf32> to vector<16x32xf32>
      %33 = arith.mulf %23, %32 : vector<16x32xf32>
      %c0_21 = arith.constant 0 : index
      %c0_22 = arith.constant 0 : index
      %34 = vector.load %arg6[%c0_21, %c0_22] : memref<1x32xf32, #tpu.memory_space<vmem>>, vector<1x32xf32>
      %35 = vector.broadcast %34 : vector<1x32xf32> to vector<16x32xf32>
      %36 = arith.mulf %33, %35 : vector<16x32xf32>
      %c0_23 = arith.constant 0 : index
      %c0_24 = arith.constant 0 : index
      %37 = vector.load %arg7[%c0_23, %c0_24] : memref<1x32xf32, #tpu.memory_space<vmem>>, vector<1x32xf32>
      %38 = vector.broadcast %37 : vector<1x32xf32> to vector<16x32xf32>
      %39 = arith.addf %36, %38 : vector<16x32xf32>
      %c0_25 = arith.constant 0 : index
      %c0_26 = arith.constant 0 : index
      %40 = vector.load %arg8[%c0_25, %c0_26] : memref<16x32xf32, #tpu.memory_space<vmem>>, vector<16x32xf32>
      tpu.vector_store %arg8[%c0_25, %c0_26], %39 {strides = array<i32>} : memref<16x32xf32, #tpu.memory_space<vmem>>, vector<16x32xf32>,
    } else {
    }
    return
  }
  func.func @transform_0(%arg0: i32, %arg1: i32) -> (i32, i32) {
    %c0_i32 = arith.constant 0 : i32
    return %arg0, %arg1 : i32, i32
  }
  func.func @transform_1(%arg0: i32, %arg1: i32) -> (i32, i32) {
    %c0_i32 = arith.constant 0 : i32
    %c0_i32_0 = arith.constant 0 : i32
    return %c0_i32, %arg1 : i32, i32
  }
  func.func @transform_2(%arg0: i32, %arg1: i32) -> (i32, i32) {
    %c0_i32 = arith.constant 0 : i32
    %c0_i32_0 = arith.constant 0 : i32
    %c0_i32_1 = arith.constant 0 : i32
    return %c0_i32, %c0_i32_0 : i32, i32
  }
  func.func @transform_3(%arg0: i32, %arg1: i32) -> (i32, i32) {
    %c0_i32 = arith.constant 0 : i32
    %c0_i32_0 = arith.constant 0 : i32
    return %arg0, %c0_i32 : i32, i32
  }
  func.func @transform_4(%arg0: i32, %arg1: i32) -> (i32, i32) {
    %c0_i32 = arith.constant 0 : i32
    %c0_i32_0 = arith.constant 0 : i32
    %c0_i32_1 = arith.constant 0 : i32
    return %c0_i32, %c0_i32_0 : i32, i32
  }
  func.func @transform_5(%arg0: i32, %arg1: i32) -> (i32, i32) {
    %c0_i32 = arith.constant 0 : i32
    %c0_i32_0 = arith.constant 0 : i32
    %c0_i32_1 = arith.constant 0 : i32
    return %c0_i32, %c0_i32_0 : i32, i32
  }
  func.func @transform_6(%arg0: i32, %arg1: i32) -> (i32, i32) {
    %c0_i32 = arith.constant 0 : i32
    %c0_i32_0 = arith.constant 0 : i32
    return %arg0, %c0_i32 : i32, i32
  }
}

</mosaic_0001>

<bundles_post_ra>
// kernel: encoder_layer_forward.7
= control target key start
LH: loop header
LB: loop body
LE: loop exit
PB: predicated region body
PF: predicated region fallthrough
CT: control target
= control target key end

     0   :  { %vm27_vm0 = vcmask 261120   ;;  %v236_v2 = vmov 0.0   ;;  %s331_s1 = inlined_call_operand.vmem [shape: f32[32,32], index: 1, kind: input, shape index: {}]   ;;  %s332_s0 = inlined_call_operand.vmem [shape: f32[16,32], index: 0, kind: input, shape index: {}]   ;;  %s333_s2 = inlined_call_operand.vmem [shape: f32[1,32], index: 2, kind: input, shape index: {}]   ;;  %s334_s3 = inlined_call_operand.vmem [shape: f32[16,32], index: 3, kind: input, shape index: {}]   ;;  %s335_s4 = inlined_call_operand.vmem [shape: f32[1,32], index: 4, kind: input, shape index: {}]   ;;  %s336_s5 = inlined_call_operand.vmem [shape: f32[1,32], index: 5, kind: input, shape index: {}]   ;;  %s337_s6 = inlined_call_operand.vmem [shape: f32[16,32], index: 6, kind: output, shape index: {}]  }
   0x1   :  { %v37_v0 = vld [vmem:[%s331_s1 + $0x18] sm:$0xff]  ;;  %v36_v1 = vld [vmem:[%s331_s1 + $0x10] sm:$0xff]  ;;  %29 = vst.msk [vmem:[#allocation2 + $0x8] sm:$0xff] %vm27_vm0, %v236_v2  ;;  %28 = vst.msk [vmem:[#allocation2] sm:$0xff] %vm27_vm0, %v236_v2 }
   0x2   :  { %220 = vmatprep.subr.msk.mxu0 %vm27_vm0, %v37_v0  ;;  %v32_v3 = vld [vmem:[%s332_s0] sm:$0xff]  ;;  %v35_v4 = vld [vmem:[%s331_s1 + $0x8] sm:$0xff] }
   0x3   :  { %221 = vmatpush3.xpose.msk.msra.mxu0 %vm27_vm0, %v37_v0  ;;  %228 = vmatprep.mubr.msk.f32.mxu0 %vm27_vm0, %v32_v3  ;;  %v34_v5 = vld [vmem:[%s331_s1] sm:$0xff]  ;;  %v33_v6 = vld [vmem:[%s332_s0 + $0x8] sm:$0xff] }
   0x4   :  { %222 = vmatprep.subr.msk.mxu0 %vm27_vm0, %v36_v1  ;;  %v211_v13 = vld [vmem:[%s333_s2] ss:$0 sm:$0xff]  ;;  %v151_v19 = vld [vmem:[%s334_s3 + $0x8] sm:$0xff] }
   0x5   :  { %v150_v16 = vld [vmem:[%s334_s3] sm:$0xff] }
   0x6   :  { %v212_v41 = vld [vmem:[%s335_s4] ss:$0 sm:$0xff] }
   0x7   :  { %223 = vmatpush3.xpose.msk.msra.mxu0 %vm27_vm0, %v36_v1  ;;  %v213_v43 = vld [vmem:[%s336_s5] ss:$0 sm:$0xff] }
   0x8   :  { %224 = vmatprep.subr.msk.mxu0 %vm27_vm0, %v35_v4  ;;  %v31_v7 = vld [vmem:[#allocation2 + $0x8] sm:$0xff]  ;;  %v30_v9 = vld [vmem:[#allocation2] sm:$0xff] }
   0xb   :  { %225 = vmatpush3.xpose.msk.msra.mxu0 %vm27_vm0, %v35_v4 }
   0xc   :  { %226 = vmatprep.subr.msk.mxu0 %vm27_vm0, %v34_v5 }
   0xf   :  { %227 = vmatpush3.xpose.msk.msra.mxu0 %vm27_vm0, %v34_v5 }
  0x12   :  { %229 = vmatmul.mubr.msk.f32.vlgmr.msra.gmra.mxu0 %vm27_vm0, %v33_v6 }
  0xd2   :  { %v230_v8 = vpop.f32.mrf.mxu0 }
  0xd3   :  { %v133_v10 = vadd.f32 %v230_v8, %v31_v7 }
  0xd4   :  { %v123_v11 = vpop.f32.mrf.mxu0 }
  0xd5   :  { %135 = vst.msk [vmem:[#allocation2 + $0x8] sm:$0xff] %vm27_vm0, %v133_v10  ;;  %v132_v12 = vadd.f32 %v123_v11, %v30_v9 }
  0xd7   :  { %134 = vst.msk [vmem:[#allocation2] sm:$0xff] %vm27_vm0, %v132_v12 }
  0xdc   :  { %v140_v14 = vld [vmem:[#allocation2 + $0x8] sm:$0xff] }
  0xdd   :  { %v149_v18 = vadd.f32 %v211_v13, %v140_v14 }
  0xde   :  { %v139_v15 = vld [vmem:[#allocation2] sm:$0xff] }
  0xdf   :  { %v148_v17 = vadd.f32 %v211_v13, %v139_v15  ;;  %v153_v22 = vadd.f32 %v151_v19, %v149_v18 }
  0xe1   :  { %v152_v20 = vadd.f32 %v150_v16, %v148_v17  ;;  %v157_v23 = vsel %vm27_vm0, %v153_v22, 0.0 }
  0xe3   :  { %v154_v21 = vsel %vm27_vm0, %v152_v20, 0.0 }
  0xe4   :  { %155 = vadd.xlane.f32.xlu0 %v154_v21 }
  0xe8   :  { %158 = vadd.xlane.f32.xlu0 %v157_v23 }
 0x16d   :  { %v156_v24 = vpop.xlane.xlu0 %155 }
 0x16e   :  { %v161_v25 = vmul.f32 0.03125, %v156_v24 }
 0x170   :  { %v163_v26 = vsub.f32 %v152_v20, %v161_v25 }
 0x171   :  { %v159_v27 = vpop.xlane.xlu0 %158 }
 0x172   :  { %v162_v28 = vmul.f32 0.03125, %v159_v27  ;;  %v165_v29 = vmul.f32 %v163_v26, %v163_v26 }
 0x174   :  { %v164_v30 = vsub.f32 %v153_v22, %v162_v28  ;;  %v167_v31 = vsel %vm27_vm0, %v165_v29, 0.0 }
 0x175   :  { %168 = vadd.xlane.f32.xlu1 %v167_v31 }
 0x176   :  { %v166_v32 = vmul.f32 %v164_v30, %v164_v30 }
 0x178   :  { %v170_v33 = vsel %vm27_vm0, %v166_v32, 0.0 }
 0x179   :  { %171 = vadd.xlane.f32.xlu1 %v170_v33 }
 0x1fe   :  { %v169_v34 = vpop.xlane.xlu1 %168 }
 0x1ff   :  { %v173_v35 = vmul.f32 0.03125, %v169_v34 }
 0x201   :  { %v175_v36 = vadd.f32 1e-05, %v173_v35 }
 0x202   :  { %v172_v37 = vpop.xlane.xlu1 %171 }
 0x203   :  { %232 = vrsqrt.f32 %v175_v36  ;;  %v174_v38 = vmul.f32 0.03125, %v172_v37 }
 0x205   :  { %v176_v39 = vadd.f32 1e-05, %v174_v38 }
 0x207   :  { %234 = vrsqrt.f32 %v176_v39 }
 0x210   :  { %v233_v40 = vpop.eup %232 }
 0x211   :  { %v179_v42 = vmul.f32 %v233_v40, %v163_v26 }
 0x213   :  { %v188_v44 = vmul.f32 %v212_v41, %v179_v42 }
 0x214   :  { %v235_v45 = vpop.eup %234 }
 0x215   :  { %v197_v46 = vadd.f32 %v213_v43, %v188_v44  ;;  %v180_v47 = vmul.f32 %v235_v45, %v164_v30 }
 0x217   :  { %199 = vst.msk [vmem:[%s337_s6] sm:$0xff] %vm27_vm0, %v197_v46  ;;  %v189_v48 = vmul.f32 %v212_v41, %v180_v47 }
 0x219   :  { %v198_v49 = vadd.f32 %v213_v43, %v189_v48 }
 0x21b   :  { %200 = vst.msk [vmem:[%s337_s6 + $0x8] sm:$0xff] %vm27_vm0, %v198_v49 }

// kernel: encoder_layer_forward.5
= control target key start
LH: loop header
LB: loop body
LE: loop exit
PB: predicated region body
PF: predicated region fallthrough
CT: control target
= control target key end

     0   :  { %vm37_vm0 = vcmask 261120   ;;  %vm18_vm1 = vcmask 785408   ;;  %v237_v2 = vmov 0.0   ;;  %s341_s1 = inlined_call_operand.vmem [shape: f32[96,32], index: 1, kind: input, shape index: {}]   ;;  %s342_s0 = inlined_call_operand.vmem [shape: f32[16,32], index: 0, kind: input, shape index: {}]   ;;  %s343_s2 = inlined_call_operand.vmem [shape: f32[1,96], index: 2, kind: input, shape index: {}]   ;;  %s344_s3 = inlined_call_operand.vmem [shape: f32[16,96], index: 3, kind: output, shape index: {}]  }
   0x1   :  { %v36_v0 = vld [vmem:[%s341_s1 + $0x58] sm:$0xff]  ;;  %v35_v1 = vld [vmem:[%s341_s1 + $0x50] sm:$0xff]  ;;  %20 = vst.msk [vmem:[#allocation2 + $0x8] sm:$0xff] %vm18_vm1, %v237_v2  ;;  %19 = vst.msk [vmem:[#allocation2] sm:$0xff] %vm18_vm1, %v237_v2 }
   0x2   :  { %209 = vmatprep.subr.msk.mxu0 %vm37_vm0, %v36_v0  ;;  %v34_v3 = vld [vmem:[%s341_s1 + $0x48] sm:$0xff]  ;;  %v23_v4 = vld [vmem:[%s342_s0] sm:$0xff]  ;;  %v32_v6 = vld [vmem:[%s341_s1 + $0x38] sm:$0xff] }
   0x3   :  { %210 = vmatpush3.xpose.msk.msra.mxu0 %vm37_vm0, %v36_v0  ;;  %233 = vmatprep.mubr.msk.f32.mxu0 %vm37_vm0, %v23_v4  ;;  %v33_v5 = vld [vmem:[%s341_s1 + $0x40] sm:$0xff]  ;;  %v31_v7 = vld [vmem:[%s341_s1 + $0x30] sm:$0xff]  ;;  %v30_v8 = vld [vmem:[%s341_s1 + $0x28] sm:$0xff] }
   0x4   :  { %211 = vmatprep.subr.msk.mxu0 %vm37_vm0, %v35_v1  ;;  %v29_v9 = vld [vmem:[%s341_s1 + $0x20] sm:$0xff]  ;;  %v28_v10 = vld [vmem:[%s341_s1 + $0x18] sm:$0xff]  ;;  %v27_v11 = vld [vmem:[%s341_s1 + $0x10] sm:$0xff] }
   0x5   :  { %v26_v12 = vld [vmem:[%s341_s1 + $0x8] sm:$0xff]  ;;  %v25_v13 = vld [vmem:[%s341_s1] sm:$0xff] }
   0x6   :  { %v24_v14 = vld [vmem:[%s342_s0 + $0x8] sm:$0xff]  ;;  %v194_v21 = vld [vmem:[%s343_s2] ss:$0 sm:$0xff] }
   0x7   :  { %212 = vmatpush3.xpose.msk.msra.mxu0 %vm37_vm0, %v35_v1 }
   0x8   :  { %213 = vmatprep.subr.msk.mxu0 %vm37_vm0, %v34_v3  ;;  %v22_v15 = vld [vmem:[#allocation2 + $0x8] sm:$0xff]  ;;  %v21_v17 = vld [vmem:[#allocation2] sm:$0xff] }
   0xb   :  { %214 = vmatpush3.xpose.msk.msra.mxu0 %vm37_vm0, %v34_v3 }
   0xc   :  { %215 = vmatprep.subr.msk.mxu0 %vm37_vm0, %v33_v5 }
   0xf   :  { %216 = vmatpush3.xpose.msk.msra.mxu0 %vm37_vm0, %v33_v5 }
  0x10   :  { %217 = vmatprep.subr.msk.mxu0 %vm37_vm0, %v32_v6 }
  0x13   :  { %218 = vmatpush3.xpose.msk.msra.mxu0 %vm37_vm0, %v32_v6 }
  0x14   :  { %219 = vmatprep.subr.msk.mxu0 %vm37_vm0, %v31_v7 }
  0x17   :  { %220 = vmatpush3.xpose.msk.msra.mxu0 %vm37_vm0, %v31_v7 }
  0x18   :  { %221 = vmatprep.subr.msk.mxu0 %vm37_vm0, %v30_v8 }
  0x1b   :  { %222 = vmatpush3.xpose.msk.msra.mxu0 %vm37_vm0, %v30_v8 }
  0x1c   :  { %223 = vmatprep.subr.msk.mxu0 %vm37_vm0, %v29_v9 }
  0x1f   :  { %224 = vmatpush3.xpose.msk.msra.mxu0 %vm37_vm0, %v29_v9 }
  0x20   :  { %225 = vmatprep.subr.msk.mxu0 %vm37_vm0, %v28_v10 }
  0x23   :  { %226 = vmatpush3.xpose.msk.msra.mxu0 %vm37_vm0, %v28_v10 }
  0x24   :  { %227 = vmatprep.subr.msk.mxu0 %vm37_vm0, %v27_v11 }
  0x27   :  { %228 = vmatpush3.xpose.msk.msra.mxu0 %vm37_vm0, %v27_v11 }
  0x28   :  { %229 = vmatprep.subr.msk.mxu0 %vm37_vm0, %v26_v12 }
  0x2b   :  { %230 = vmatpush3.xpose.msk.msra.mxu0 %vm37_vm0, %v26_v12 }
  0x2c   :  { %231 = vmatprep.subr.msk.mxu0 %vm37_vm0, %v25_v13 }
  0x2f   :  { %232 = vmatpush3.xpose.msk.msra.mxu0 %vm37_vm0, %v25_v13 }
  0x32   :  { %234 = vmatmul.mubr.msk.f32.vlgmr.msra.gmra.mxu0 %vm37_vm0, %v24_v14 }
  0xf2   :  { %v235_v16 = vpop.f32.mrf.mxu0 }
  0xf3   :  { %v156_v18 = vadd.f32 %v235_v16, %v22_v15 }
  0xf4   :  { %v146_v19 = vpop.f32.mrf.mxu0 }
  0xf5   :  { %159 = vst.msk [vmem:[#allocation2 + $0x8] sm:$0xff] %vm18_vm1, %v156_v18  ;;  %v155_v20 = vadd.f32 %v146_v19, %v21_v17 }
  0xf7   :  { %158 = vst.msk [vmem:[#allocation2] sm:$0xff] %vm18_vm1, %v155_v20 }
  0xfc   :  { %v164_v22 = vld [vmem:[#allocation2 + $0x8] sm:$0xff] }
  0xfd   :  { %v173_v23 = vadd.f32 %v194_v21, %v164_v22 }
  0xfe   :  { %v163_v24 = vld [vmem:[#allocation2] sm:$0xff] }
  0xff   :  { %175 = vst.msk [vmem:[%s344_s3 + $0x8] sm:$0xff] %vm18_vm1, %v173_v23  ;;  %v172_v25 = vadd.f32 %v194_v21, %v163_v24 }
 0x101   :  { %174 = vst.msk [vmem:[%s344_s3] sm:$0xff] %vm18_vm1, %v172_v25 }

// kernel: encoder_layer_forward.8
= control target key start
LH: loop header
LB: loop body
LE: loop exit
PB: predicated region body
PF: predicated region fallthrough
CT: control target
= control target key end

     0   :  { %vm33_vm0 = vcmask 261120   ;;  %vm18_vm1 = vcmask 523264   ;;  %v207_v2 = vmov 0.0   ;;  %s291_s1 = inlined_call_operand.vmem [shape: f32[64,32], index: 1, kind: input, shape index: {}]   ;;  %s292_s0 = inlined_call_operand.vmem [shape: f32[16,32], index: 0, kind: input, shape index: {}]   ;;  %s293_s2 = inlined_call_operand.vmem [shape: f32[1,64], index: 2, kind: input, shape index: {}]   ;;  %s294_s3 = inlined_call_operand.vmem [shape: f32[16,64], index: 3, kind: output, shape index: {}]  }
   0x1   :  { %v32_v0 = vld [vmem:[%s291_s1 + $0x38] sm:$0xff]  ;;  %v31_v1 = vld [vmem:[%s291_s1 + $0x30] sm:$0xff]  ;;  %20 = vst.msk [vmem:[#allocation2 + $0x8] sm:$0xff] %vm18_vm1, %v207_v2  ;;  %19 = vst.msk [vmem:[#allocation2] sm:$0xff] %vm18_vm1, %v207_v2 }
   0x2   :  { %187 = vmatprep.subr.msk.mxu0 %vm33_vm0, %v32_v0  ;;  %v23_v3 = vld [vmem:[%s292_s0] sm:$0xff]  ;;  %v30_v4 = vld [vmem:[%s291_s1 + $0x28] sm:$0xff]  ;;  %v28_v6 = vld [vmem:[%s291_s1 + $0x18] sm:$0xff] }
   0x3   :  { %188 = vmatpush3.xpose.msk.msra.mxu0 %vm33_vm0, %v32_v0  ;;  %203 = vmatprep.mubr.msk.f32.mxu0 %vm33_vm0, %v23_v3  ;;  %v29_v5 = vld [vmem:[%s291_s1 + $0x20] sm:$0xff]  ;;  %v27_v7 = vld [vmem:[%s291_s1 + $0x10] sm:$0xff]  ;;  %v26_v8 = vld [vmem:[%s291_s1 + $0x8] sm:$0xff] }
   0x4   :  { %189 = vmatprep.subr.msk.mxu0 %vm33_vm0, %v31_v1  ;;  %v25_v9 = vld [vmem:[%s291_s1] sm:$0xff]  ;;  %v24_v10 = vld [vmem:[%s292_s0 + $0x8] sm:$0xff] }
   0x5   :  { %v176_v17 = vld [vmem:[%s293_s2] ss:$0 sm:$0xff] }
   0x7   :  { %190 = vmatpush3.xpose.msk.msra.mxu0 %vm33_vm0, %v31_v1 }
   0x8   :  { %191 = vmatprep.subr.msk.mxu0 %vm33_vm0, %v30_v4  ;;  %v22_v11 = vld [vmem:[#allocation2 + $0x8] sm:$0xff]  ;;  %v21_v13 = vld [vmem:[#allocation2] sm:$0xff] }
   0xb   :  { %192 = vmatpush3.xpose.msk.msra.mxu0 %vm33_vm0, %v30_v4 }
   0xc   :  { %193 = vmatprep.subr.msk.mxu0 %vm33_vm0, %v29_v5 }
   0xf   :  { %194 = vmatpush3.xpose.msk.msra.mxu0 %vm33_vm0, %v29_v5 }
  0x10   :  { %195 = vmatprep.subr.msk.mxu0 %vm33_vm0, %v28_v6 }
  0x13   :  { %196 = vmatpush3.xpose.msk.msra.mxu0 %vm33_vm0, %v28_v6 }
  0x14   :  { %197 = vmatprep.subr.msk.mxu0 %vm33_vm0, %v27_v7 }
  0x17   :  { %198 = vmatpush3.xpose.msk.msra.mxu0 %vm33_vm0, %v27_v7 }
  0x18   :  { %199 = vmatprep.subr.msk.mxu0 %vm33_vm0, %v26_v8 }
  0x1b   :  { %200 = vmatpush3.xpose.msk.msra.mxu0 %vm33_vm0, %v26_v8 }
  0x1c   :  { %201 = vmatprep.subr.msk.mxu0 %vm33_vm0, %v25_v9 }
  0x1f   :  { %202 = vmatpush3.xpose.msk.msra.mxu0 %vm33_vm0, %v25_v9 }
  0x22   :  { %204 = vmatmul.mubr.msk.f32.vlgmr.msra.gmra.mxu0 %vm33_vm0, %v24_v10 }
  0xe2   :  { %v205_v12 = vpop.f32.mrf.mxu0 }
  0xe3   :  { %v140_v14 = vadd.f32 %v205_v12, %v22_v11 }
  0xe4   :  { %v130_v15 = vpop.f32.mrf.mxu0 }
  0xe5   :  { %143 = vst.msk [vmem:[#allocation2 + $0x8] sm:$0xff] %vm18_vm1, %v140_v14  ;;  %v139_v16 = vadd.f32 %v130_v15, %v21_v13 }
  0xe7   :  { %142 = vst.msk [vmem:[#allocation2] sm:$0xff] %vm18_vm1, %v139_v16 }
  0xec   :  { %v148_v18 = vld [vmem:[#allocation2 + $0x8] sm:$0xff] }
  0xed   :  { %v157_v19 = vadd.f32 %v176_v17, %v148_v18 }
  0xee   :  { %v147_v20 = vld [vmem:[#allocation2] sm:$0xff] }
  0xef   :  { %v159_v21 = vmax.f32 %v157_v19, 0.0  ;;  %v156_v22 = vadd.f32 %v176_v17, %v147_v20 }
  0xf1   :  { %161 = vst.msk [vmem:[%s294_s3 + $0x8] sm:$0xff] %vm18_vm1, %v159_v21  ;;  %v158_v23 = vmax.f32 %v156_v22, 0.0 }
  0xf3   :  { %160 = vst.msk [vmem:[%s294_s3] sm:$0xff] %vm18_vm1, %v158_v23 }

// kernel: encoder_layer_forward.6
= control target key start
LH: loop header
LB: loop body
LE: loop exit
PB: predicated region body
PF: predicated region fallthrough
CT: control target
= control target key end

     0   :  { %s1000_s6 = smov 0   ;;  %s1086_s0 = inlined_call_operand.vmem [shape: f32[2,8,96], index: 0, kind: input, shape index: {}]   ;;  %s1087_s1 = inlined_call_operand.vmem [shape: f32[2,8,32], index: 1, kind: output, shape index: {}]  }
   0x1 LB: > { %s849_s7 = sadd.s32 4294967295, %s972_s6   ;;  %p853_p0 = scmp.ge.s32.totalorder %s972_s6, 1  ;;  %s972_s6 = sphi %s1000_s6, %s11_s6  }
   0x2   : > { %p86_p1 = scmp.lt.s32.totalorder %s972_s6, 3 }
   0x4   : > { %p87_p2 = pnand %p853_p0, %p86_p1 }
   0x5   : > { %p104_p3 = scmp.lt.s32.totalorder (!%p87_p2), %s849_s7, 1  ;;  %s976_s12 = smov (!%p87_p2), 96  }
   0x6   : > { %90 = sbr.rel (%p87_p2) target bundleno = 1469 (0x5bd), region = 24  ;;  %s977_s13 = smov (!%p87_p2), 64  }
   0x7   : > { %s978_s14 = smov (!%p87_p2), 88   ;;  %s979_s15 = smov (!%p87_p2), 120  }
   0x8   : > { %s980_s16 = smov (!%p87_p2), 80   ;;  %s981_s17 = smov (!%p87_p2), 72  }
   0x9   : > { %s982_s18 = smov (!%p87_p2), 112   ;;  %s983_s19 = smov (!%p87_p2), 104  }
   0xa   : > { %s984_s20 = smov (!%p87_p2), 56   ;;  %s985_s21 = smov (!%p87_p2), 40  }
   0xb   : > { %v974_v0 = vmov 0.0   ;;  %vm975_vm0 = vmmov 0   ;;  %s1089_s7 = smov (!%p104_p3, %s849_s7), 1  ;;  %vm116_vm1 = vcmask 64512   ;;  %s986_s22 = smov 48   ;;  %vm790_vm2 = vcmask 130048  }
   0xc   : > { %886 = vmatprep.subr.mxu0 %v974_v0  ;;  %888 = vmatprep.mubr.msk.f32.mxu0 %vm975_vm0, %v974_v0  ;;  %s854_s8 = sshll.u32 %s1089_s7, 3  ;;  %s987_s23 = smov 8   ;;  %vm792_vm3 = vcmask 195584   ;;  %vm794_vm4 = vcmask 261120  }
   0xd   : > { %891 = vmatprep.subr.mxu1 %v974_v0  ;;  %893 = vmatprep.mubr.msk.f32.mxu1 %vm975_vm0, %v974_v0  ;;  %s107_s11 = scalar_lea.vmem %s1086_s0, %s854_s8  ;;  %s988_s24 = smov 16  }
   0xe   : > { %v1022_v1 = vld [vmem:[%s107_s11] sm:$0xff]  ;;  %s989_s25 = smov 24   ;;  %s111_s28 = scalar_lea.vmem %s1087_s1, %s854_s8 }
   0xf   : > { %114 = vrot.lane.b32.xlu0 %v1022_v1, %s976_s12  ;;  %203 = vrot.lane.b32.xlu1 %v1022_v1, %s977_s13 }
  0x13   : > { %281 = vrot.lane.b32.xlu1 %v1022_v1, %s978_s14 }
  0x17   : > { %279 = vrot.lane.b32.xlu1 %v1022_v1, %s979_s15 }
  0x1b   : > { %447 = vrot.lane.b32.xlu1 %v1022_v1, %s980_s16 }
  0x81   : > { %v115_v2 = vpop.permute.xlu0 %114  ;;  %v204_v7 = vpop.permute.xlu1 %203 }
  0x82   : > { %887 = vmatpush3.xpose.msk.msra.mxu0 %vm116_vm1, %v115_v2  ;;  %892 = vmatpush3.msra.mxu1 %v204_v7 }
  0x83   : > { %901 = vmatprep.subr.mxu0 %v974_v0  ;;  %896 = vmatprep.subr.mxu1 %v974_v0 }
  0x85   : > { %889 = vmatmul.mubr.msk.f32.vlgmr.msra.gmra.mxu0 %vm116_vm1, %v1022_v1  ;;  %v282_v13 = vpop.permute.xlu1 %281 }
  0x86   : > { %903 = vmatprep.mubr.msk.f32.mxu0 %vm975_vm0, %v974_v0 }
  0x89   : > { %v280_v14 = vpop.permute.xlu1 %279 }
  0x8d   : > { %v448_v15 = vpop.permute.xlu1 %447 }
 0x145   : > { %v187_v3 = vpop.f32.mrf.mxu0 }
 0x146   : > { %v191_v4 = vmul.f32 0.35355338, %v187_v3 }
 0x147   : > { %v890_v5 = vpop.f32.mrf.mxu0 }
 0x148   : > { %v192_v6 = vsel %vm116_vm1, %v191_v4, -inf }
 0x149   : > { %193 = vmax.xlane.f32.xlu0 %v192_v6 }
 0x15f   : > { %613 = vrot.lane.b32.xlu0 %v1022_v1, %s981_s17 }
 0x1d2   : > { %v194_v8 = vpop.xlane.xlu0 %193 }
 0x1d3   : > { %v195_v9 = vsub.f32 %v191_v4, %v194_v8 }
 0x1d5   : > { %v196_v10 = vmul.f32 1.442695, %v195_v9 }
 0x1d6   : > { %v614_v20 = vpop.permute.xlu0 %613 }
 0x1d7   : > { %950 = vpow2.f32 %v196_v10 }
 0x1e4   : > { %v951_v11 = vpop.eup %950 }
 0x1e5   : > { %v198_v12 = vsel %vm116_vm1, %v951_v11, 0.0 }
 0x1e6   : > { %199 = vadd.xlane.f32.xlu1 %v198_v12 }
 0x1f7   : > { %445 = vrot.lane.b32.xlu1 %v1022_v1, %s982_s18 }
 0x1fb   : > { %611 = vrot.lane.b32.xlu1 %v1022_v1, %s983_s19 }
 0x26f   : > { %v200_v16 = vpop.xlane.xlu1 %199 }
 0x270   : > { %952 = vrcp.f32 %v200_v16 }
 0x273   : > { %v446_v19 = vpop.permute.xlu1 %445 }
 0x277   : > { %v612_v21 = vpop.permute.xlu1 %611 }
 0x27d   : > { %v953_v17 = vpop.eup %952 }
 0x27e   : > { %v202_v18 = vmul.f32 %v953_v17, %v951_v11 }
 0x280   : > { %894 = vmatmul.mubr.msk.f32.vlgmr.msra.gmra.mxu1 %vm116_vm1, %v202_v18 }
 0x281   : > { %897 = vmatpush3.xpose.msk.msra.mxu1 %vm116_vm1, %v282_v13  ;;  %898 = vmatprep.mubr.msk.f32.mxu1 %vm975_vm0, %v974_v0 }
 0x282   : > { %906 = vmatprep.subr.mxu1 %v974_v0 }
 0x284   : > { %899 = vmatmul.mubr.msk.f32.vlgmr.msra.gmra.mxu1 %vm116_vm1, %v280_v14 }
 0x285   : > { %907 = vmatpush3.xpose.msk.msra.mxu1 %vm116_vm1, %v448_v15  ;;  %908 = vmatprep.mubr.msk.f32.mxu1 %vm975_vm0, %v974_v0 }
 0x286   : > { %916 = vmatprep.subr.mxu1 %v974_v0 }
 0x288   : > { %909 = vmatmul.mubr.msk.f32.vlgmr.msra.gmra.mxu1 %vm116_vm1, %v446_v19 }
 0x289   : > { %917 = vmatpush3.xpose.msk.msra.mxu1 %vm116_vm1, %v614_v20  ;;  %918 = vmatprep.mubr.msk.f32.mxu1 %vm975_vm0, %v974_v0 }
 0x28c   : > { %919 = vmatmul.mubr.msk.f32.vlgmr.msra.gmra.mxu1 %vm116_vm1, %v612_v21 }
 0x340   : > { %v1056_v22 = vpop.f32.mrf.mxu1 }
 0x342   : > { %v895_v23 = vpop.f32.mrf.mxu1 }
 0x344   : > { %v353_v24 = vpop.f32.mrf.mxu1 }
 0x345   : > { %v357_v25 = vmul.f32 0.35355338, %v353_v24 }
 0x346   : > { %v900_v26 = vpop.f32.mrf.mxu1 }
 0x347   : > { %v358_v27 = vsel %vm116_vm1, %v357_v25, -inf }
 0x348   : > { %359 = vmax.xlane.f32.xlu1 %v358_v27  ;;  %v519_v28 = vpop.f32.mrf.mxu1 }
 0x349   : > { %v523_v29 = vmul.f32 0.35355338, %v519_v28 }
 0x34a   : > { %v910_v30 = vpop.f32.mrf.mxu1 }
 0x34b   : > { %v524_v31 = vsel %vm116_vm1, %v523_v29, -inf }
 0x34c   : > { %525 = vmax.xlane.f32.xlu0 %v524_v31  ;;  %v685_v32 = vpop.f32.mrf.mxu1 }
 0x34d   : > { %v689_v33 = vmul.f32 0.35355338, %v685_v32 }
 0x34e   : > { %v920_v34 = vpop.f32.mrf.mxu1 }
 0x34f   : > { %v690_v35 = vsel %vm116_vm1, %v689_v33, -inf }
 0x350   : > { %691 = vmax.xlane.f32.xlu1 %v690_v35 }
 0x361   : > { %369 = vrot.lane.b32.xlu1 %v1022_v1, %s984_s20 }
 0x3d1   : > { %v360_v36 = vpop.xlane.xlu1 %359 }
 0x3d2   : > { %v361_v37 = vsub.f32 %v357_v25, %v360_v36 }
 0x3d4   : > { %v362_v38 = vmul.f32 1.442695, %v361_v37 }
 0x3d5   : > { %v526_v39 = vpop.xlane.xlu0 %525 }
 0x3d6   : > { %954 = vpow2.f32 %v362_v38  ;;  %v527_v40 = vsub.f32 %v523_v29, %v526_v39 }
 0x3d8   : > { %v528_v41 = vmul.f32 1.442695, %v527_v40 }
 0x3d9   : > { %v692_v42 = vpop.xlane.xlu1 %691 }
 0x3da   : > { %956 = vpow2.f32 %v528_v41  ;;  %v693_v43 = vsub.f32 %v689_v33, %v692_v42 }
 0x3dc   : > { %v694_v44 = vmul.f32 1.442695, %v693_v43 }
 0x3dd   : > { %v370_v45 = vpop.permute.xlu1 %369 }
 0x3de   : > { %958 = vpow2.f32 %v694_v44  ;;  %902 = vmatpush3.msra.mxu0 %v370_v45 }
 0x3df   : > { %911 = vmatprep.subr.mxu0 %v974_v0 }
 0x3e3   : > { %v955_v46 = vpop.eup %954 }
 0x3e4   : > { %v364_v47 = vsel %vm116_vm1, %v955_v46, 0.0 }
 0x3e5   : > { %365 = vadd.xlane.f32.xlu1 %v364_v47 }
 0x3e7   : > { %v957_v48 = vpop.eup %956 }
 0x3e8   : > { %v530_v49 = vsel %vm116_vm1, %v957_v48, 0.0 }
 0x3e9   : > { %531 = vadd.xlane.f32.xlu1 %v530_v49 }
 0x3eb   : > { %v959_v50 = vpop.eup %958 }
 0x3ec   : > { %v696_v51 = vsel %vm116_vm1, %v959_v50, 0.0 }
 0x3ed   : > { %697 = vadd.xlane.f32.xlu0 %v696_v51 }
 0x3fa   : > { %701 = vrot.lane.b32.xlu1 %v1022_v1, %s985_s21 }
 0x403   : > { %535 = vrot.lane.b32.xlu0 %v1022_v1, %s986_s22 }
 0x46e   : > { %v366_v52 = vpop.xlane.xlu1 %365 }
 0x46f   : > { %960 = vrcp.f32 %v366_v52 }
 0x472   : > { %v532_v53 = vpop.xlane.xlu1 %531 }
 0x473   : > { %962 = vrcp.f32 %v532_v53 }
 0x476   : > { %v698_v54 = vpop.xlane.xlu0 %697  ;;  %v702_v59 = vpop.permute.xlu1 %701 }
 0x477   : > { %964 = vrcp.f32 %v698_v54 }
 0x47a   : > { %v536_v56 = vpop.permute.xlu0 %535 }
 0x47c   : > { %v961_v55 = vpop.eup %960 }
 0x47d   : > { %v368_v57 = vmul.f32 %v961_v55, %v955_v46 }
 0x47f   : > { %904 = vmatmul.mubr.msk.f32.vlgmr.msra.gmra.mxu0 %vm116_vm1, %v368_v57 }
 0x480   : > { %v963_v58 = vpop.eup %962  ;;  %912 = vmatpush3.msra.mxu0 %v536_v56  ;;  %913 = vmatprep.mubr.msk.f32.mxu0 %vm975_vm0, %v974_v0 }
 0x481   : > { %921 = vmatprep.subr.mxu0 %v974_v0  ;;  %v534_v60 = vmul.f32 %v963_v58, %v957_v48 }
 0x483   : > { %914 = vmatmul.mubr.msk.f32.vlgmr.msra.gmra.mxu0 %vm116_vm1, %v534_v60 }
 0x484   : > { %v965_v61 = vpop.eup %964  ;;  %922 = vmatpush3.msra.mxu0 %v702_v59  ;;  %923 = vmatprep.mubr.msk.f32.mxu0 %vm975_vm0, %v974_v0 }
 0x485   : > { %v700_v62 = vmul.f32 %v965_v61, %v959_v50 }
 0x487   : > { %924 = vmatmul.mubr.msk.f32.vlgmr.msra.gmra.mxu0 %vm116_vm1, %v700_v62 }
 0x53f   : > { %v441_v63 = vpop.f32.mrf.mxu0 }
 0x540   : > { %778 = vrot.lane.b32.xlu1 %v441_v63, %s987_s23 }
 0x541   : > { %v905_v1 = vpop.f32.mrf.mxu0 }
 0x543   : > { %v607_v2 = vpop.f32.mrf.mxu0 }
 0x544   : > { %782 = vrot.lane.b32.xlu0 %v607_v2, %s988_s24 }
 0x545   : > { %v915_v3 = vpop.f32.mrf.mxu0 }
 0x547   : > { %v773_v4 = vpop.f32.mrf.mxu0 }
 0x548   : > { %786 = vrot.lane.b32.xlu1 %v773_v4, %s989_s25 }
 0x549   : > { %v925_v5 = vpop.f32.mrf.mxu0 }
 0x5b2   : > { %v779_v6 = vpop.permute.xlu1 %778 }
 0x5b3   : > { %v789_v0 = vsel %vm116_vm1, %v1056_v22, %v779_v6 }
 0x5b6   : > { %v783_v7 = vpop.permute.xlu0 %782 }
 0x5b7   : > { %v791_v8 = vsel %vm790_vm2, %v789_v0, %v783_v7 }
 0x5ba   : > { %v787_v9 = vpop.permute.xlu1 %786 }
 0x5bb   : > { %v793_v10 = vsel %vm792_vm3, %v791_v8, %v787_v9 }
 0x5bc   : > { %795 = vst.msk [vmem:[%s111_s28] sm:$0xff] %vm794_vm4, %v793_v10 }
 0x5bd PF: > { %s11_s6 = sadd.s32 1, %s972_s6  }
 0x5be   : > { %p8_p4 = scmp.ge.s32.totalorder %s11_s6, 4  }
 0x5c0   :  { %10 = sbr.rel (!%p8_p4) target bundleno = 1 (0x1), region = 54 }

// kernel: encoder_layer_forward.9
= control target key start
LH: loop header
LB: loop body
LE: loop exit
PB: predicated region body
PF: predicated region fallthrough
CT: control target
= control target key end

     0   :  { %vm38_vm0 = vcmask 523264   ;;  %vm27_vm1 = vcmask 261120   ;;  %v237_v2 = vmov 0.0   ;;  %s332_s1 = inlined_call_operand.vmem [shape: f32[32,64], index: 1, kind: input, shape index: {}]   ;;  %s333_s0 = inlined_call_operand.vmem [shape: f32[16,64], index: 0, kind: input, shape index: {}]   ;;  %s334_s2 = inlined_call_operand.vmem [shape: f32[1,32], index: 2, kind: input, shape index: {}]   ;;  %s335_s3 = inlined_call_operand.vmem [shape: f32[16,32], index: 3, kind: input, shape index: {}]   ;;  %s336_s4 = inlined_call_operand.vmem [shape: f32[1,32], index: 4, kind: input, shape index: {}]   ;;  %s337_s5 = inlined_call_operand.vmem [shape: f32[1,32], index: 5, kind: input, shape index: {}]   ;;  %s338_s6 = inlined_call_operand.vmem [shape: f32[16,32], index: 6, kind: output, shape index: {}]  }
   0x1   :  { %v37_v0 = vld [vmem:[%s332_s1 + $0x18] sm:$0xff]  ;;  %v36_v1 = vld [vmem:[%s332_s1 + $0x10] sm:$0xff]  ;;  %29 = vst.msk [vmem:[#allocation2 + $0x8] sm:$0xff] %vm27_vm1, %v237_v2  ;;  %28 = vst.msk [vmem:[#allocation2] sm:$0xff] %vm27_vm1, %v237_v2 }
   0x2   :  { %221 = vmatprep.subr.msk.mxu0 %vm38_vm0, %v37_v0  ;;  %v32_v3 = vld [vmem:[%s333_s0] sm:$0xff]  ;;  %v35_v4 = vld [vmem:[%s332_s1 + $0x8] sm:$0xff] }
   0x3   :  { %222 = vmatpush3.xpose.msk.msra.mxu0 %vm38_vm0, %v37_v0  ;;  %229 = vmatprep.mubr.msk.f32.mxu0 %vm38_vm0, %v32_v3  ;;  %v34_v5 = vld [vmem:[%s332_s1] sm:$0xff]  ;;  %v33_v6 = vld [vmem:[%s333_s0 + $0x8] sm:$0xff] }
   0x4   :  { %223 = vmatprep.subr.msk.mxu0 %vm38_vm0, %v36_v1  ;;  %v212_v13 = vld [vmem:[%s334_s2] ss:$0 sm:$0xff]  ;;  %v152_v19 = vld [vmem:[%s335_s3 + $0x8] sm:$0xff] }
   0x5   :  { %v151_v16 = vld [vmem:[%s335_s3] sm:$0xff] }
   0x6   :  { %v213_v41 = vld [vmem:[%s336_s4] ss:$0 sm:$0xff] }
   0x7   :  { %224 = vmatpush3.xpose.msk.msra.mxu0 %vm38_vm0, %v36_v1  ;;  %v214_v43 = vld [vmem:[%s337_s5] ss:$0 sm:$0xff] }
   0x8   :  { %225 = vmatprep.subr.msk.mxu0 %vm38_vm0, %v35_v4  ;;  %v31_v7 = vld [vmem:[#allocation2 + $0x8] sm:$0xff]  ;;  %v30_v9 = vld [vmem:[#allocation2] sm:$0xff] }
   0xb   :  { %226 = vmatpush3.xpose.msk.msra.mxu0 %vm38_vm0, %v35_v4 }
   0xc   :  { %227 = vmatprep.subr.msk.mxu0 %vm38_vm0, %v34_v5 }
   0xf   :  { %228 = vmatpush3.xpose.msk.msra.mxu0 %vm38_vm0, %v34_v5 }
  0x12   :  { %230 = vmatmul.mubr.msk.f32.vlgmr.msra.gmra.mxu0 %vm38_vm0, %v33_v6 }
  0xd2   :  { %v231_v8 = vpop.f32.mrf.mxu0 }
  0xd3   :  { %v133_v10 = vadd.f32 %v231_v8, %v31_v7 }
  0xd4   :  { %v123_v11 = vpop.f32.mrf.mxu0 }
  0xd5   :  { %136 = vst.msk [vmem:[#allocation2 + $0x8] sm:$0xff] %vm27_vm1, %v133_v10  ;;  %v132_v12 = vadd.f32 %v123_v11, %v30_v9 }
  0xd7   :  { %135 = vst.msk [vmem:[#allocation2] sm:$0xff] %vm27_vm1, %v132_v12 }
  0xdc   :  { %v141_v14 = vld [vmem:[#allocation2 + $0x8] sm:$0xff] }
  0xdd   :  { %v150_v18 = vadd.f32 %v212_v13, %v141_v14 }
  0xde   :  { %v140_v15 = vld [vmem:[#allocation2] sm:$0xff] }
  0xdf   :  { %v149_v17 = vadd.f32 %v212_v13, %v140_v15  ;;  %v154_v22 = vadd.f32 %v152_v19, %v150_v18 }
  0xe1   :  { %v153_v20 = vadd.f32 %v151_v16, %v149_v17  ;;  %v158_v23 = vsel %vm27_vm1, %v154_v22, 0.0 }
  0xe3   :  { %v155_v21 = vsel %vm27_vm1, %v153_v20, 0.0 }
  0xe4   :  { %156 = vadd.xlane.f32.xlu0 %v155_v21 }
  0xe8   :  { %159 = vadd.xlane.f32.xlu0 %v158_v23 }
 0x16d   :  { %v157_v24 = vpop.xlane.xlu0 %156 }
 0x16e   :  { %v162_v25 = vmul.f32 0.03125, %v157_v24 }
 0x170   :  { %v164_v26 = vsub.f32 %v153_v20, %v162_v25 }
 0x171   :  { %v160_v27 = vpop.xlane.xlu0 %159 }
 0x172   :  { %v163_v28 = vmul.f32 0.03125, %v160_v27  ;;  %v166_v29 = vmul.f32 %v164_v26, %v164_v26 }
 0x174   :  { %v165_v30 = vsub.f32 %v154_v22, %v163_v28  ;;  %v168_v31 = vsel %vm27_vm1, %v166_v29, 0.0 }
 0x175   :  { %169 = vadd.xlane.f32.xlu1 %v168_v31 }
 0x176   :  { %v167_v32 = vmul.f32 %v165_v30, %v165_v30 }
 0x178   :  { %v171_v33 = vsel %vm27_vm1, %v167_v32, 0.0 }
 0x179   :  { %172 = vadd.xlane.f32.xlu1 %v171_v33 }
 0x1fe   :  { %v170_v34 = vpop.xlane.xlu1 %169 }
 0x1ff   :  { %v174_v35 = vmul.f32 0.03125, %v170_v34 }
 0x201   :  { %v176_v36 = vadd.f32 1e-05, %v174_v35 }
 0x202   :  { %v173_v37 = vpop.xlane.xlu1 %172 }
 0x203   :  { %233 = vrsqrt.f32 %v176_v36  ;;  %v175_v38 = vmul.f32 0.03125, %v173_v37 }
 0x205   :  { %v177_v39 = vadd.f32 1e-05, %v175_v38 }
 0x207   :  { %235 = vrsqrt.f32 %v177_v39 }
 0x210   :  { %v234_v40 = vpop.eup %233 }
 0x211   :  { %v180_v42 = vmul.f32 %v234_v40, %v164_v26 }
 0x213   :  { %v189_v44 = vmul.f32 %v213_v41, %v180_v42 }
 0x214   :  { %v236_v45 = vpop.eup %235 }
 0x215   :  { %v198_v46 = vadd.f32 %v214_v43, %v189_v44  ;;  %v181_v47 = vmul.f32 %v236_v45, %v165_v30 }
 0x217   :  { %200 = vst.msk [vmem:[%s338_s6] sm:$0xff] %vm27_vm1, %v198_v46  ;;  %v190_v48 = vmul.f32 %v213_v41, %v181_v47 }
 0x219   :  { %v199_v49 = vadd.f32 %v214_v43, %v190_v48 }
 0x21b   :  { %201 = vst.msk [vmem:[%s338_s6 + $0x8] sm:$0xff] %vm27_vm1, %v199_v49 }

</bundles_post_ra>
